<compile_context>
chip_gen: v6e
topology: v6e:2x2x1
jax: 0.10.0
libtpu: 0.0.40
codegen_flags: <defaults>
</compile_context>

<pallas_src>
import functools

import jax
import jax.numpy as jnp
from jax.experimental import pallas as pl
from jax.experimental.pallas import tpu as pltpu

BN_EPS = 1e-5
LANE = 128                       # pad Cout up to a multiple of the lane width
COMPUTE_DTYPE = jnp.float32      # one-line switch to jnp.bfloat16 (see header)

VMEM_BUDGET = 24 * 1024 * 1024   # per-step working-set target (fits v7x 64 MiB)
VMEM_LIMIT = 48 * 1024 * 1024    # scoped-VMEM request, <= v7x physical VMEM


def _round_up(x, m):
    return (x + m - 1) // m * m


def _slab_vmem_bytes(h, w, cin):
    # (H+2, W+2, Cin) per-sample slab with (8, 128) trailing-tile padding, f32.
    return (h + 2) * _round_up(w + 2, 8) * _round_up(cin, LANE) * 4


def _pick_channel_tile(cp, hw, k, cin, h, w):
    """Largest output-channel tile whose double-buffered pass-1 blocks fit VMEM."""
    slab = 2 * _slab_vmem_bytes(h, w, cin)          # double-buffered input slab
    for tn in (512, 256, 128):
        if cp % tn != 0:
            continue
        need = slab + 2 * 4 * (k * tn + hw * tn + 2 * tn)
        if need <= VMEM_BUDGET:
            return tn
    # TODO(synk): when even TN=128 with a whole-sample spatial block exceeds the
    # budget (very large H*W), add halo'd row tiling (memory_space=pl.ANY +
    # manual make_async_copy of TH+2-row slabs) instead of per-sample blocks.
    return LANE


def _pick_hw_tile(hw, cp, cout):
    """Lane-dense spatial tile for pass 2 that divides H*W (falls back to full)."""
    for ts in (2048, 1024, 512, 256, 128):
        if hw % ts == 0 and 2 * 4 * (ts * cp + cout * ts) <= VMEM_BUDGET:
            return ts
    return hw


def conv_stats_kernel(x_ref, w_ref, conv_ref, stats_ref, *, H, W, Cin, inv_rows):
    """Pass 1: one (sample, channel-tile) step — 3x3 conv as 9 tap GEMMs + stats.

    x_ref:     (1, H+2, W+2, Cin)  spatially padded NHWC slab for one sample
    w_ref:     (9*Cin, TN)         tap-major conv weights for TN output channels
    conv_ref:  (1, H*W, TN)        f32 conv output tile (row = flattened (h, w))
    stats_ref: (1, 2, TN)          [channel sum, centered sum-of-squares] partials
    """
    x = x_ref[0]                                     # (H+2, W+2, Cin) in VMEM
    acc = None
    for kh in range(3):
        for kw in range(3):
            # In-kernel im2col: shifted (H, W, Cin) window -> (H*W, Cin) rows.
            patch = x[kh:kh + H, kw:kw + W, :].reshape(H * W, Cin)
            tap = kh * 3 + kw
            wt = w_ref[tap * Cin:(tap + 1) * Cin, :]           # (Cin, TN)
            part = jnp.dot(patch, wt, preferred_element_type=jnp.float32)
            acc = part if acc is None else acc + part
    conv_ref[0] = acc

    # Welford-style centered partials (combined across samples in the wrapper):
    # two direct row stores, no concat/relayout.
    s = jnp.sum(acc, axis=0, keepdims=True)                    # (1, TN)
    d = acc - s * inv_rows                                     # center by tile mean
    stats_ref[0, 0:1, :] = s
    stats_ref[0, 1:2, :] = jnp.sum(d * d, axis=0, keepdims=True)


def bn_relu_transpose_kernel(conv_ref, scale_ref, shift_ref, o_ref, *, Cout):
    """Pass 2: folded BN (scale/shift) + ReLU, emitted channels-first.

    conv_ref:  (1, TS, CP) f32 conv rows (lane-dense channels)
    scale_ref: (1, CP), shift_ref: (1, CP)
    o_ref:     (1, Cout, TS)  channels-first tile -> wrapper epilogue is a free
                              reshape (no XLA transpose / extra HBM round trip)
    """
    y = conv_ref[0] * scale_ref[...] + shift_ref[...]
    y = jnp.maximum(y, 0.0)
    # Tile-aligned (TS, CP) -> (CP, TS) transpose, then drop the padded channels.
    yt = jnp.transpose(y)
    o_ref[0] = yt[:Cout, :].astype(o_ref.dtype)


def conv_block_forward(x_nchw, weight_oihw, gamma, beta):
    """ConvBlock forward. x_nchw: (N, Cin, H, W); weight_oihw: (Cout, Cin, 3, 3)."""
    N, Cin, H, W = x_nchw.shape
    Cout = weight_oihw.shape[0]
    K = 9 * Cin
    CP = _round_up(Cout, LANE)          # lane-dense output channels
    HW = H * W

    TN = _pick_channel_tile(CP, HW, K, Cin, H, W)
    GCH = CP // TN
    TS = _pick_hw_tile(HW, CP, Cout)
    GS = HW // TS

    # ---- glue (plain JAX): layout + spatial halo padding only (~1.3x activation
    # traffic instead of the old 9x im2col inflation) -----------------------------
    x_nhwc = jnp.transpose(x_nchw, (0, 2, 3, 1)).astype(COMPUTE_DTYPE)
    x_pad = jnp.pad(x_nhwc, ((0, 0), (1, 1), (1, 1), (0, 0)))

    # (Cout, Cin, 3, 3) -> tap-major (9*Cin, Cout) -> pad Cout to CP (lane-dense).
    w2 = jnp.transpose(weight_oihw, (2, 3, 1, 0)).reshape(K, Cout).astype(jnp.float32)
    w2 = jnp.pad(w2, ((0, 0), (0, CP - Cout))).astype(COMPUTE_DTYPE)

    # ---- pass 1: per-(sample, channel-tile) conv GEMMs + centered BN partials ---
    # Grid is fully "parallel" (N >= 2 keeps both v7x TensorCores busy); the
    # x_pad block index is constant across the channel axis so the slab is
    # DMA'd once per sample.  The weight block is small; single-buffering it
    # (pipeline_mode=pl.Buffered(1)) would save a little VMEM when GCH == 1.
    kernel1 = functools.partial(conv_stats_kernel, H=H, W=W, Cin=Cin,
                                inv_rows=1.0 / HW)
    conv_flat, stats = pl.pallas_call(
        kernel1,
        out_shape=(
            jax.ShapeDtypeStruct((N, HW, CP), jnp.float32),
            jax.ShapeDtypeStruct((N, 2, CP), jnp.float32),
        ),
        grid=(N, GCH),
        in_specs=[
            pl.BlockSpec((1, H + 2, W + 2, Cin), lambda n, j: (n, 0, 0, 0)),
            pl.BlockSpec((K, TN), lambda n, j: (0, j)),
        ],
        out_specs=(
            pl.BlockSpec((1, HW, TN), lambda n, j: (n, 0, j)),
            pl.BlockSpec((1, 2, TN), lambda n, j: (n, 0, j)),
        ),
        compiler_params=pltpu.CompilerParams(
            dimension_semantics=("parallel", "parallel"),
            vmem_limit_bytes=VMEM_LIMIT),
        cost_estimate=pl.CostEstimate(
            flops=2 * N * HW * K * CP,
            transcendentals=0,
            bytes_accessed=4 * (N * (H + 2) * (W + 2) * Cin + K * CP
                                + N * HW * CP + N * 2 * CP)),
    )(x_pad, w2)

    # ---- fold BN into per-channel scale/shift (tiny, plain JAX) -----------------
    # Chan/Welford combine of the per-sample centered partials (equal group sizes).
    rows = jnp.float32(HW)
    count = jnp.float32(N * HW)
    sum_nc = stats[:, 0, :]                                   # (N, CP)
    mean_nc = sum_nc / rows
    mean = jnp.sum(sum_nc, axis=0) / count                    # (CP,)
    m2 = jnp.sum(stats[:, 1, :], axis=0) + rows * jnp.sum((mean_nc - mean) ** 2, axis=0)
    var = jnp.maximum(m2 / count, 0.0)                        # biased, train-mode BN
    # Padded channels have sum=var=0; gamma_p=0 keeps their scale/shift at 0.
    gamma_p = jnp.pad(gamma.astype(jnp.float32), (0, CP - Cout))
    beta_p = jnp.pad(beta.astype(jnp.float32), (0, CP - Cout))
    scale = gamma_p * jax.lax.rsqrt(var + BN_EPS)
    shift = beta_p - mean * scale
    scale2d = scale.reshape(1, CP)
    shift2d = shift.reshape(1, CP)

    # ---- pass 2: scale/shift + ReLU, written channels-first ---------------------
    kernel2 = functools.partial(bn_relu_transpose_kernel, Cout=Cout)
    out_ncs = pl.pallas_call(
        kernel2,
        out_shape=jax.ShapeDtypeStruct((N, Cout, HW), jnp.float32),
        grid=(N, GS),
        in_specs=[
            pl.BlockSpec((1, TS, CP), lambda n, s: (n, s, 0)),
            pl.BlockSpec((1, CP), lambda n, s: (0, 0)),
            pl.BlockSpec((1, CP), lambda n, s: (0, 0)),
        ],
        out_specs=pl.BlockSpec((1, Cout, TS), lambda n, s: (n, 0, s)),
        compiler_params=pltpu.CompilerParams(
            dimension_semantics=("parallel", "parallel"),
            vmem_limit_bytes=VMEM_LIMIT),
        cost_estimate=pl.CostEstimate(
            flops=3 * N * HW * CP,
            transcendentals=0,
            bytes_accessed=4 * (N * HW * CP + N * Cout * HW + 4 * CP)),
    )(conv_flat, scale2d, shift2d)

    # Channels-first tiles from pass 2 make this a free reshape (no transpose,
    # no channel slice, no extra HBM round trip).
    return out_ncs.reshape(N, Cout, H, W)


def conv_block_reference(x_nchw, weight_oihw, gamma, beta):
    """Pure-JAX reference matching nn.Sequential(Conv2d, BatchNorm2d, ReLU), train mode."""
    conv = jax.lax.conv_general_dilated(
        x_nchw.astype(jnp.float32), weight_oihw.astype(jnp.float32),
        window_strides=(1, 1), padding=((1, 1), (1, 1)),
        dimension_numbers=("NCHW", "OIHW", "NCHW"))
    mean = jnp.mean(conv, axis=(0, 2, 3), keepdims=True)
    var = jnp.mean((conv - mean) ** 2, axis=(0, 2, 3), keepdims=True)
    y = (conv - mean) * jax.lax.rsqrt(var + BN_EPS)
    y = y * gamma.reshape(1, -1, 1, 1) + beta.reshape(1, -1, 1, 1)
    return jnp.maximum(y, 0.0)


if __name__ == "__main__":
    key = jax.random.PRNGKey(0)
    k_x, k_w, k_g, k_b = jax.random.split(key, 4)

    N, C_IN, C_OUT, H, W = 2, 4, 8, 16, 16

    x = jax.random.normal(k_x, (N, C_IN, H, W), dtype=jnp.float32)
    # Conv2d weight (Cout, Cin, kH, kW), bias=False.
    weight = 0.1 * jax.random.normal(k_w, (C_OUT, C_IN, 3, 3), dtype=jnp.float32)
    # BatchNorm2d affine params (non-trivial so the affine path is exercised).
    gamma = 1.0 + 0.1 * jax.random.normal(k_g, (C_OUT,), dtype=jnp.float32)
    beta = 0.1 * jax.random.normal(k_b, (C_OUT,), dtype=jnp.float32)

    out = conv_block_forward(x, weight, gamma, beta)
    out = jax.block_until_ready(out)

    ref = conv_block_reference(x, weight, gamma, beta)
    assert out.shape == (N, C_OUT, H, W)
    # f32 compute dtype -> strict tolerance (relax deliberately if COMPUTE_DTYPE
    # is flipped to bfloat16 per the review).
    assert jnp.allclose(out, ref, atol=1e-4, rtol=1e-4), "mismatch vs reference"

    print("KERNEL_OK")
</pallas_src>

<mosaic_0001>
module attributes {stable_mosaic.version = 11 : i64} {
  func.func @conv_stats_kernel(%arg0: i32, %arg1: i32, %arg2: memref<1x18x18x4xf32, #tpu.memory_space<vmem>>, %arg3: memref<36x128xf32, #tpu.memory_space<vmem>>, %arg4: memref<1x256x128xf32, #tpu.memory_space<vmem>>, %arg5: memref<1x2x128xf32, #tpu.memory_space<vmem>>) attributes {dimension_semantics = [#tpu.dimension_semantics<parallel>, #tpu.dimension_semantics<parallel>], iteration_bounds = array<i64: 2, 1>, scalar_prefetch = 0 : i64, scratch_operands = 0 : i64, tpu.core_type = #tpu.core_type<tc>, window_params = [{transform_indices = @transform_0, window_bounds = array<i64: 1, 18, 18, 4>}, {transform_indices = @transform_1, window_bounds = array<i64: 36, 128>}, {transform_indices = @transform_2, window_bounds = array<i64: 1, 256, 128>}, {transform_indices = @transform_3, window_bounds = array<i64: 1, 2, 128>}]} {
    %c0 = arith.constant 0 : index
    %c0_0 = arith.constant 0 : index
    %c0_1 = arith.constant 0 : index
    %c0_2 = arith.constant 0 : index
    %0 = vector.load %arg2[%c0, %c0_0, %c0_1, %c0_2] : memref<1x18x18x4xf32, #tpu.memory_space<vmem>>, vector<1x18x18x4xf32>
    %1 = vector.shape_cast %0 : vector<1x18x18x4xf32> to vector<18x18x4xf32>
    %2 = vector.extract_strided_slice %1 {offsets = [0, 0, 0], sizes = [16, 16, 4], strides = [1, 1, 1]} : vector<18x18x4xf32> to vector<16x16x4xf32>
    %3 = vector.shape_cast %2 : vector<16x16x4xf32> to vector<256x4xf32>
    %c0_3 = arith.constant 0 : index
    %c0_4 = arith.constant 0 : index
    %4 = vector.load %arg3[%c0_3, %c0_4] : memref<36x128xf32, #tpu.memory_space<vmem>>, vector<4x128xf32>
    %cst = arith.constant dense<0.000000e+00> : vector<256x128xf32>
    %5 = tpu.matmul %3, %4, %cst {dimension_numbers = #tpu.dot_dimension_numbers<[1], [0], [0], [1], [0, 0, 1, 1], [], []>} : vector<256x4xf32>, vector<4x128xf32>, vector<256x128xf32> -> vector<256x128xf32>
    %6 = vector.extract_strided_slice %1 {offsets = [0, 1, 0], sizes = [16, 16, 4], strides = [1, 1, 1]} : vector<18x18x4xf32> to vector<16x16x4xf32>
    %7 = vector.shape_cast %6 : vector<16x16x4xf32> to vector<256x4xf32>
    %c4 = arith.constant 4 : index
    %c0_5 = arith.constant 0 : index
    %8 = vector.load %arg3[%c4, %c0_5] : memref<36x128xf32, #tpu.memory_space<vmem>>, vector<4x128xf32>
    %cst_6 = arith.constant dense<0.000000e+00> : vector<256x128xf32>
    %9 = tpu.matmul %7, %8, %cst_6 {dimension_numbers = #tpu.dot_dimension_numbers<[1], [0], [0], [1], [0, 0, 1, 1], [], []>} : vector<256x4xf32>, vector<4x128xf32>, vector<256x128xf32> -> vector<256x128xf32>
    %10 = arith.addf %5, %9 : vector<256x128xf32>
    %11 = vector.extract_strided_slice %1 {offsets = [0, 2, 0], sizes = [16, 16, 4], strides = [1, 1, 1]} : vector<18x18x4xf32> to vector<16x16x4xf32>
    %12 = vector.shape_cast %11 : vector<16x16x4xf32> to vector<256x4xf32>
    %c8 = arith.constant 8 : index
    %c0_7 = arith.constant 0 : index
    %13 = vector.load %arg3[%c8, %c0_7] : memref<36x128xf32, #tpu.memory_space<vmem>>, vector<4x128xf32>
    %cst_8 = arith.constant dense<0.000000e+00> : vector<256x128xf32>
    %14 = tpu.matmul %12, %13, %cst_8 {dimension_numbers = #tpu.dot_dimension_numbers<[1], [0], [0], [1], [0, 0, 1, 1], [], []>} : vector<256x4xf32>, vector<4x128xf32>, vector<256x128xf32> -> vector<256x128xf32>
    %15 = arith.addf %10, %14 : vector<256x128xf32>
    %16 = vector.extract_strided_slice %1 {offsets = [1, 0, 0], sizes = [16, 16, 4], strides = [1, 1, 1]} : vector<18x18x4xf32> to vector<16x16x4xf32>
    %17 = vector.shape_cast %16 : vector<16x16x4xf32> to vector<256x4xf32>
    %c12 = arith.constant 12 : index
    %c0_9 = arith.constant 0 : index
    %18 = vector.load %arg3[%c12, %c0_9] : memref<36x128xf32, #tpu.memory_space<vmem>>, vector<4x128xf32>
    %cst_10 = arith.constant dense<0.000000e+00> : vector<256x128xf32>
    %19 = tpu.matmul %17, %18, %cst_10 {dimension_numbers = #tpu.dot_dimension_numbers<[1], [0], [0], [1], [0, 0, 1, 1], [], []>} : vector<256x4xf32>, vector<4x128xf32>, vector<256x128xf32> -> vector<256x128xf32>
    %20 = arith.addf %15, %19 : vector<256x128xf32>
    %21 = vector.extract_strided_slice %1 {offsets = [1, 1, 0], sizes = [16, 16, 4], strides = [1, 1, 1]} : vector<18x18x4xf32> to vector<16x16x4xf32>
    %22 = vector.shape_cast %21 : vector<16x16x4xf32> to vector<256x4xf32>
    %c16 = arith.constant 16 : index
    %c0_11 = arith.constant 0 : index
    %23 = vector.load %arg3[%c16, %c0_11] : memref<36x128xf32, #tpu.memory_space<vmem>>, vector<4x128xf32>
    %cst_12 = arith.constant dense<0.000000e+00> : vector<256x128xf32>
    %24 = tpu.matmul %22, %23, %cst_12 {dimension_numbers = #tpu.dot_dimension_numbers<[1], [0], [0], [1], [0, 0, 1, 1], [], []>} : vector<256x4xf32>, vector<4x128xf32>, vector<256x128xf32> -> vector<256x128xf32>
    %25 = arith.addf %20, %24 : vector<256x128xf32>
    %26 = vector.extract_strided_slice %1 {offsets = [1, 2, 0], sizes = [16, 16, 4], strides = [1, 1, 1]} : vector<18x18x4xf32> to vector<16x16x4xf32>
    %27 = vector.shape_cast %26 : vector<16x16x4xf32> to vector<256x4xf32>
    %c20 = arith.constant 20 : index
    %c0_13 = arith.constant 0 : index
    %28 = vector.load %arg3[%c20, %c0_13] : memref<36x128xf32, #tpu.memory_space<vmem>>, vector<4x128xf32>
    %cst_14 = arith.constant dense<0.000000e+00> : vector<256x128xf32>
    %29 = tpu.matmul %27, %28, %cst_14 {dimension_numbers = #tpu.dot_dimension_numbers<[1], [0], [0], [1], [0, 0, 1, 1], [], []>} : vector<256x4xf32>, vector<4x128xf32>, vector<256x128xf32> -> vector<256x128xf32>
    %30 = arith.addf %25, %29 : vector<256x128xf32>
    %31 = vector.extract_strided_slice %1 {offsets = [2, 0, 0], sizes = [16, 16, 4], strides = [1, 1, 1]} : vector<18x18x4xf32> to vector<16x16x4xf32>
    %32 = vector.shape_cast %31 : vector<16x16x4xf32> to vector<256x4xf32>
    %c24 = arith.constant 24 : index
    %c0_15 = arith.constant 0 : index
    %33 = vector.load %arg3[%c24, %c0_15] : memref<36x128xf32, #tpu.memory_space<vmem>>, vector<4x128xf32>
    %cst_16 = arith.constant dense<0.000000e+00> : vector<256x128xf32>
    %34 = tpu.matmul %32, %33, %cst_16 {dimension_numbers = #tpu.dot_dimension_numbers<[1], [0], [0], [1], [0, 0, 1, 1], [], []>} : vector<256x4xf32>, vector<4x128xf32>, vector<256x128xf32> -> vector<256x128xf32>
    %35 = arith.addf %30, %34 : vector<256x128xf32>
    %36 = vector.extract_strided_slice %1 {offsets = [2, 1, 0], sizes = [16, 16, 4], strides = [1, 1, 1]} : vector<18x18x4xf32> to vector<16x16x4xf32>
    %37 = vector.shape_cast %36 : vector<16x16x4xf32> to vector<256x4xf32>
    %c28 = arith.constant 28 : index
    %c0_17 = arith.constant 0 : index
    %38 = vector.load %arg3[%c28, %c0_17] : memref<36x128xf32, #tpu.memory_space<vmem>>, vector<4x128xf32>
    %cst_18 = arith.constant dense<0.000000e+00> : vector<256x128xf32>
    %39 = tpu.matmul %37, %38, %cst_18 {dimension_numbers = #tpu.dot_dimension_numbers<[1], [0], [0], [1], [0, 0, 1, 1], [], []>} : vector<256x4xf32>, vector<4x128xf32>, vector<256x128xf32> -> vector<256x128xf32>
    %40 = arith.addf %35, %39 : vector<256x128xf32>
    %41 = vector.extract_strided_slice %1 {offsets = [2, 2, 0], sizes = [16, 16, 4], strides = [1, 1, 1]} : vector<18x18x4xf32> to vector<16x16x4xf32>
    %42 = vector.shape_cast %41 : vector<16x16x4xf32> to vector<256x4xf32>
    %c32 = arith.constant 32 : index
    %c0_19 = arith.constant 0 : index
    %43 = vector.load %arg3[%c32, %c0_19] : memref<36x128xf32, #tpu.memory_space<vmem>>, vector<4x128xf32>
    %cst_20 = arith.constant dense<0.000000e+00> : vector<256x128xf32>
    %44 = tpu.matmul %42, %43, %cst_20 {dimension_numbers = #tpu.dot_dimension_numbers<[1], [0], [0], [1], [0, 0, 1, 1], [], []>} : vector<256x4xf32>, vector<4x128xf32>, vector<256x128xf32> -> vector<256x128xf32>
    %45 = arith.addf %40, %44 : vector<256x128xf32>
    %c0_21 = arith.constant 0 : index
    %c0_22 = arith.constant 0 : index
    %c0_23 = arith.constant 0 : index
    %46 = vector.load %arg4[%c0_21, %c0_22, %c0_23] : memref<1x256x128xf32, #tpu.memory_space<vmem>>, vector<1x256x128xf32>
    %47 = vector.shape_cast %46 : vector<1x256x128xf32> to vector<256x128xf32>
    %48 = vector.shape_cast %45 : vector<256x128xf32> to vector<1x256x128xf32>
    tpu.vector_store %arg4[%c0_21, %c0_22, %c0_23], %48 {strides = array<i32>} : memref<1x256x128xf32, #tpu.memory_space<vmem>>, vector<1x256x128xf32>,
    %cst_24 = arith.constant dense<0.000000e+00> : vector<128xf32>
    %49 = vector.multi_reduction <add>, %45, %cst_24 [0] : vector<256x128xf32> to vector<128xf32>
    %50 = vector.shape_cast %49 : vector<128xf32> to vector<1x128xf32>
    %cst_25 = arith.constant 3.906250e-03 : f32
    %51 = vector.broadcast %cst_25 : f32 to vector<1x128xf32>
    %52 = arith.mulf %50, %51 : vector<1x128xf32>
    %53 = vector.broadcast %52 : vector<1x128xf32> to vector<256x128xf32>
    %54 = arith.subf %45, %53 : vector<256x128xf32>
    %c0_26 = arith.constant 0 : index
    %c0_27 = arith.constant 0 : index
    %c0_28 = arith.constant 0 : index
    %55 = vector.load %arg5[%c0_26, %c0_27, %c0_28] : memref<1x2x128xf32, #tpu.memory_space<vmem>>, vector<1x1x128xf32>
    %56 = vector.shape_cast %55 : vector<1x1x128xf32> to vector<1x128xf32>
    %57 = vector.shape_cast %50 : vector<1x128xf32> to vector<1x1x128xf32>
    tpu.vector_store %arg5[%c0_26, %c0_27, %c0_28], %57 {strides = array<i32>} : memref<1x2x128xf32, #tpu.memory_space<vmem>>, vector<1x1x128xf32>,
    %58 = arith.mulf %54, %54 : vector<256x128xf32>
    %cst_29 = arith.constant dense<0.000000e+00> : vector<128xf32>
    %59 = vector.multi_reduction <add>, %58, %cst_29 [0] : vector<256x128xf32> to vector<128xf32>
    %60 = vector.shape_cast %59 : vector<128xf32> to vector<1x128xf32>
    %c0_30 = arith.constant 0 : index
    %c1 = arith.constant 1 : index
    %c0_31 = arith.constant 0 : index
    %61 = vector.load %arg5[%c0_30, %c1, %c0_31] : memref<1x2x128xf32, #tpu.memory_space<vmem>>, vector<1x1x128xf32>
    %62 = vector.shape_cast %61 : vector<1x1x128xf32> to vector<1x128xf32>
    %63 = vector.shape_cast %60 : vector<1x128xf32> to vector<1x1x128xf32>
    tpu.vector_store %arg5[%c0_30, %c1, %c0_31], %63 {strides = array<i32>} : memref<1x2x128xf32, #tpu.memory_space<vmem>>, vector<1x1x128xf32>,
    return
  }
  func.func @transform_0(%arg0: i32, %arg1: i32) -> (i32, i32, i32, i32) {
    %c0_i32 = arith.constant 0 : i32
    %c0_i32_0 = arith.constant 0 : i32
    %c0_i32_1 = arith.constant 0 : i32
    %c0_i32_2 = arith.constant 0 : i32
    return %arg0, %c0_i32, %c0_i32_0, %c0_i32_1 : i32, i32, i32, i32
  }
  func.func @transform_1(%arg0: i32, %arg1: i32) -> (i32, i32) {
    %c0_i32 = arith.constant 0 : i32
    %c0_i32_0 = arith.constant 0 : i32
    return %c0_i32, %arg1 : i32, i32
  }
  func.func @transform_2(%arg0: i32, %arg1: i32) -> (i32, i32, i32) {
    %c0_i32 = arith.constant 0 : i32
    %c0_i32_0 = arith.constant 0 : i32
    return %arg0, %c0_i32, %arg1 : i32, i32, i32
  }
  func.func @transform_3(%arg0: i32, %arg1: i32) -> (i32, i32, i32) {
    %c0_i32 = arith.constant 0 : i32
    %c0_i32_0 = arith.constant 0 : i32
    return %arg0, %c0_i32, %arg1 : i32, i32, i32
  }
}

</mosaic_0001>

<bundles_post_ra>
// kernel: tpu_custom_call.1
= control target key start
LH: loop header
LB: loop body
LE: loop exit
PB: predicated region body
PF: predicated region fallthrough
CT: control target
= control target key end

     0   :  { %9 = vsyncpa [#allocation3], 0  ;;  %s6539_s0 = inlined_call_operand.vmem [shape: f32[2,18,18,4], index: 0, kind: input, shape index: {}]   ;;  %s6540_s1 = inlined_call_operand.vmem [shape: f32[36,128], index: 1, kind: input, shape index: {}]   ;;  %s6541_s2 = inlined_call_operand.hbm [shape: f32[2,256,128], index: 2, kind: output, shape index: {0}]   ;;  %s6542_s3 = inlined_call_operand.hbm [shape: f32[2,2,128], index: 3, kind: output, shape index: {1}]  }
   0x1   :  { %11 = vsyncpa [#allocation3 + $0x1], 0 }
   0x2   :  { %12 = vsyncpa [#allocation5], 0 }
   0x3   :  { %14 = vsyncpa [#allocation5 + $0x1], 0  ;;  %s4591_s12 = smov 0   ;;  %s4593_s13 = smov 0  }
   0x4   :  { %s4595_s14 = smov 0   ;;  %s4597_s15 = smov 0  }
   0x5   :  { %s4599_s16 = smov 0   ;;  %s4601_s17 = smov 0  }
   0x6 LB: > { %s3333_s18 = sadd.s32 4294967295, %s4565_s17   ;;  %s3334_s19 = sadd.s32 4294967294, %s4565_s17   ;;  %s4565_s17 = sphi %s4601_s17, %s20_s17   ;;  %s4561_s16 = sphi %s4599_s16, %s6843_s16   ;;  %s4557_s15 = sphi %s4597_s15, %s6842_s15   ;;  %s4553_s14 = sphi %s4595_s14, %s6841_s14   ;;  %s4549_s13 = sphi %s4593_s13, %s6840_s13   ;;  %s4545_s12 = sphi %s4591_s12, %s6839_s12  }
   0x7   : > { %s32_s20 = sadd.s32 1, %s4561_s16  ;;  %s93_s21 = sadd.s32 1, %s4553_s14 }
   0x8   : > { %p34_p0 = scmp.ge.s32.totalorder %s32_s20, 2  ;;  %p103_p1 = scmp.ne.s32.totalorder %s4553_s14, %s4549_s13 }
   0x9   : > { %p104_p2 = scmp.eq.s32.totalorder %s3333_s18, 1  ;;  %p109_p3 = scmp.ne.s32.totalorder %s4549_s13, %s4545_s12 }
   0xa   : > { %s6845_s20 = smov (%p34_p0, %s32_s20), 0  ;;  %p110_p5 = scmp.eq.s32.totalorder %s3334_s19, 1 }
   0xb   : > { %p4631_p4 = por %p104_p2, %p103_p1  ;;  %s88_s23 = ssub.s32 %s4561_s16, %s6845_s20 }
   0xc   : > { %p3338_p6 = scmp.ge.s32.totalorder %s4565_s17, 1  ;;  %p91_p7 = scmp.eq.s32.totalorder %s88_s23, 0 }
   0xd   : > { %p4638_p8 = por %p110_p5, %p109_p3  ;;  %p171_p9 = scmp.lt.s32.totalorder %s4565_s17, 3 }
   0xe   : > { %s4644_s25 = scalar_select %p91_p7, %s4553_s14, %s93_s21  }
   0xf   : > { %p172_p10 = pnand %p3338_p6, %p171_p9 }
  0x11   : > { %175 = sbr.rel (%p172_p10) target bundleno = 643 (0x283), region = 28 }
  0x16   : > { %v397_v0 = vld [vmem:[%s6540_s1 + $0x4] sm:$0xf]  ;;  %vm463_vm0 = vcmask 1043456   ;;  %p204_p11 = scmp.lt.s32.totalorder %s4557_s15, 1  ;;  %v267_v1 = vld [vmem:[%s6540_s1] sm:$0xf] }
  0x17   : > { %4394 = vmatprep.subr.msk.mxu1 %vm463_vm0, %v397_v0  ;;  %3944 = vmatprep.subr.msk.mxu0 %vm463_vm0, %v397_v0  ;;  %v1065_v2 = vld [vmem:[%s6540_s1 + $0x8] sm:$0xf]  ;;  %vm316_vm1 = vcmask 1046528   ;;  %vm398_vm2 = vcmask 31744   ;;  %v4709_v21 = vld [vmem:[%s6540_s1 + $0xc] sm:$0xf] }
  0x18   : > { %4395 = vmatpush3.msk.msra.mxu1 %vm463_vm0, %v397_v0  ;;  %3945 = vmatpush3.msk.msra.mxu0 %vm463_vm0, %v397_v0  ;;  %s205_s5 = scalar_select %p204_p11, %s4557_s15, 1  ;;  %v4727_v28 = vld [vmem:[%s6540_s1 + $0x10] sm:$0xf]  ;;  %vm984_vm3 = vcmask 1045504  }
  0x19   : > { %3994 = vmatprep.subr.msk.mxu1 %vm463_vm0, %v267_v1  ;;  %4044 = vmatprep.subr.msk.mxu0 %vm463_vm0, %v1065_v2  ;;  %s3646_s8 = sshll.u32 %s4557_s15, 12  ;;  %s4567_s23 = smov [#allocation2]  }
  0x1a   : > { %s4396_s6 = smul.u32 432, %s205_s5  ;;  %s6136_s5 = sand.u32 1, %s4549_s13  }
  0x1b   : > { %s6394_s18 = scalar_lea.hbm %s6541_s2, %s3646_s8  ;;  %s3180_s19 = scalar_lea.sflag [#allocation3], %s6136_s5 }
  0x1c   : > { %s4666_s9 = scalar_lea.vmem %s6539_s0, %s4396_s6  ;;  %s3339_s6 = sshll.u32 %s6136_s5, 8 }
  0x1d   : > { %v4669_v3 = vld [vmem:[%s4666_s9] sm:$0xff]  ;;  %v4672_v4 = vld [vmem:[%s4666_s9 + $0x8] sm:$0xff]  ;;  %v4684_v10 = vld [vmem:[%s4666_s9 + $0x10] sm:$0x3]  ;;  %s6158_s7 = scalar_lea.vmem [#allocation2], %s3339_s6  ;;  %s4463_s26 = sshll.u32 %s4567_s23, 4  ;;  %s4464_s26 = int_to_ptr.vmem [resolvable:$false] %s4463_s26 }
  0x1e   : > { %v4675_v5 = vld [vmem:[%s4666_s9 + $0xc0] sm:$0xff]  ;;  %v317_v6 = vrot.slane %v4669_v3, 1  ;;  %v318_v7 = vrot.slane %v4672_v4, 1  ;;  %v4680_v8 = vld [vmem:[%s4666_s9 + $0xc8] sm:$0xff]  ;;  %v320_v12 = vrot.slane %v4684_v10, 1  ;;  %v4692_v14 = vld [vmem:[%s4666_s9 + $0x18] sm:$0xff] }
  0x1f   : > { %v357_v9 = vrot.slane %v4675_v5, 1  ;;  %v358_v11 = vrot.slane %v4680_v8, 1  ;;  %v4689_v13 = vld [vmem:[%s4666_s9 + $0xd0] sm:$0x3]  ;;  %v4697_v17 = vld [vmem:[%s4666_s9 + $0x20] sm:$0xff]  ;;  %v322_v18 = vrot.slane %v4692_v14, 1 }
  0x20   : > { %v319_v15 = vsel %vm316_vm1, %v317_v6, %v318_v7  ;;  %v360_v16 = vrot.slane %v4689_v13, 1  ;;  %v4701_v19 = vld [vmem:[%s4666_s9 + $0xd8] sm:$0xff]  ;;  %v4704_v20 = vld [vmem:[%s4666_s9 + $0xe0] sm:$0xff]  ;;  %v321_v23 = vsel %vm316_vm1, %v318_v7, %v320_v12  ;;  %v323_v24 = vrot.slane %v4697_v17, 1  ;;  %v4719_v26 = vld [vmem:[%s4666_s9 + $0x28] sm:$0x3] }
  0x21   : > { %3946 = vmatprep.mubr.msk.f32.mxu0 %vm398_vm2, %v319_v15  ;;  %v4713_v22 = vsel %vm316_vm1, %v357_v9, %v358_v11  ;;  %v362_v25 = vrot.slane %v4701_v19, 1  ;;  %v4722_v27 = vld [vmem:[%s4666_s9 + $0xe8] sm:$0x3]  ;;  %v363_v30 = vrot.slane %v4704_v20, 1  ;;  %v325_v31 = vrot.slane %v4719_v26, 1  ;;  %v4739_v33 = vld [vmem:[%s4666_s9 + $0x30] sm:$0xff] }
  0x22   : > { %6627 = vst [vmem:[#allocation8_spill] sm:$0xff] %v4713_v22  ;;  %3970 = vmatprep.mubr.msk.f32.mxu1 %vm398_vm2, %v4713_v22  ;;  %3947 = vmatmul.mubr.msk.f32.vlgmr.msra.gmra.mxu0 %vm398_vm2, %v321_v23  ;;  %v4733_v29 = vsel %vm316_vm1, %v358_v11, %v360_v16  ;;  %v365_v32 = vrot.slane %v4722_v27, 1  ;;  %v4742_v34 = vld [vmem:[%s4666_s9 + $0x38] sm:$0xff]  ;;  %v4745_v35 = vld [vmem:[%s4666_s9 + $0xf0] sm:$0xff]  ;;  %v4751_v36 = vsel %vm316_vm1, %v322_v18, %v323_v24  ;;  %v327_v37 = vrot.slane %v4739_v33, 1  ;;  %v4779_v47 = vld [vmem:[%s4666_s9 + $0x48] sm:$0xff] }
  0x23   : > { %6628 = vst [vmem:[#allocation9_spill] sm:$0xff] %v4733_v29  ;;  %3971 = vmatmul.mubr.msk.f32.vlgmr.msra.gmra.mxu1 %vm398_vm2, %v4733_v29  ;;  %4045 = vmatpush3.msk.msra.mxu0 %vm463_vm0, %v1065_v2  ;;  %6629 = vst [vmem:[#allocation10_spill] sm:$0xff] %v4751_v36  ;;  %v328_v38 = vrot.slane %v4742_v34, 1  ;;  %v4756_v39 = vld [vmem:[%s4666_s9 + $0xf8] sm:$0xff]  ;;  %v367_v40 = vrot.slane %v4745_v35, 1  ;;  %v4766_v42 = vsel %vm316_vm1, %v362_v25, %v363_v30  ;;  %v4782_v48 = vld [vmem:[%s4666_s9 + $0x50] sm:$0xff] }
  0x24   : > { %v4760_v41 = vld [vmem:[%s4666_s9 + $0x40] sm:$0x3]  ;;  %3995 = vmatpush3.msk.msra.mxu1 %vm463_vm0, %v267_v1  ;;  %3949 = vmatprep.mubr.msk.f32.mxu0 %vm398_vm2, %v4751_v36  ;;  %6630 = vst [vmem:[#allocation11_spill] sm:$0xff] %v4766_v42  ;;  %v4769_v43 = vsel %vm316_vm1, %v323_v24, %v325_v31  ;;  %v4772_v44 = vsel %vm316_vm1, %v363_v30, %v365_v32  ;;  %v368_v45 = vrot.slane %v4756_v39, 1  ;;  %v332_v52 = vrot.slane %v4779_v47, 1  ;;  %v4793_v53 = vld [vmem:[%s4666_s9 + $0x108] sm:$0xff] }
  0x25   : > { %6631 = vst [vmem:[#allocation12_spill] sm:$0xff] %v4769_v43  ;;  %6632 = vst [vmem:[#allocation13_spill] sm:$0xff] %v4772_v44  ;;  %v4776_v46 = vld [vmem:[%s4666_s9 + $0x100] sm:$0x3]  ;;  %3973 = vmatprep.mubr.msk.f32.mxu1 %vm398_vm2, %v4766_v42  ;;  %v4787_v49 = vsel %vm316_vm1, %v327_v37, %v328_v38  ;;  %v330_v50 = vrot.slane %v4760_v41, 1  ;;  %v4796_v54 = vld [vmem:[%s4666_s9 + $0x110] sm:$0xff]  ;;  %4094 = vmatprep.subr.msk.mxu1 %vm463_vm0, %v4709_v21 }
  0x26   : > { %6633 = vst [vmem:[#allocation14_spill] sm:$0xff] %v4787_v49  ;;  %v370_v51 = vrot.slane %v4776_v46, 1  ;;  %v4799_v55 = vld [vmem:[%s4666_s9 + $0x60] sm:$0xff]  ;;  %3950 = vmatmul.mubr.msk.f32.gmra.mxu0 %vm398_vm2, %v4769_v43  ;;  %v4806_v56 = vsel %vm316_vm1, %v367_v40, %v368_v45  ;;  %v333_v57 = vrot.slane %v4782_v48, 1  ;;  %v372_v58 = vrot.slane %v4793_v53, 1  ;;  %v4815_v61 = vld [vmem:[%s4666_s9 + $0x68] sm:$0xff]  ;;  %4144 = vmatprep.subr.msk.mxu0 %vm463_vm0, %v4727_v28 }
  0x27   : > { %6634 = vst [vmem:[#allocation15_spill] sm:$0xff] %v4806_v56  ;;  %v373_v59 = vrot.slane %v4796_v54, 1  ;;  %v4812_v60 = vld [vmem:[%s4666_s9 + $0x58] sm:$0x3]  ;;  %3974 = vmatmul.mubr.msk.f32.gmra.mxu1 %vm398_vm2, %v4772_v44  ;;  %3952 = vmatprep.mubr.msk.f32.mxu0 %vm398_vm2, %v4787_v49  ;;  %v4824_v62 = vsel %vm316_vm1, %v328_v38, %v330_v50  ;;  %v337_v1 = vrot.slane %v4799_v55, 1  ;;  %v4832_v2 = vld [vmem:[%s4666_s9 + $0x120] sm:$0xff] }
  0x28   : > { %6635 = vst [vmem:[#allocation16_spill] sm:$0xff] %v4824_v62  ;;  %v335_v63 = vrot.slane %v4812_v60, 1  ;;  %v4828_v0 = vld [vmem:[%s4666_s9 + $0x118] sm:$0x3]  ;;  %v4835_v6 = vld [vmem:[%s4666_s9 + $0x128] sm:$0xff]  ;;  %3976 = vmatprep.mubr.msk.f32.mxu1 %vm398_vm2, %v4806_v56  ;;  %v4840_v7 = vsel %vm316_vm1, %v368_v45, %v370_v51  ;;  %v4843_v9 = vsel %vm316_vm1, %v332_v52, %v333_v57  ;;  %v338_v12 = vrot.slane %v4815_v61, 1 }
  0x29   : > { %6636 = vst [vmem:[#allocation17_spill] sm:$0xff] %v4840_v7  ;;  %6637 = vst [vmem:[#allocation18_spill] sm:$0xff] %v4843_v9  ;;  %v375_v11 = vrot.slane %v4828_v0, 1  ;;  %v4848_v15 = vld [vmem:[%s4666_s9 + $0x70] sm:$0x3]  ;;  %v4854_v18 = vsel %vm316_vm1, %v372_v58, %v373_v59  ;;  %v377_v23 = vrot.slane %v4832_v2, 1 }
  0x2a   : > { %v4851_v16 = vld [vmem:[%s4666_s9 + $0x130] sm:$0x3]  ;;  %6638 = vst [vmem:[#allocation19_spill] sm:$0xff] %v4854_v18  ;;  %v378_v24 = vrot.slane %v4835_v6, 1  ;;  %v4859_v25 = vld [vmem:[%s4666_s9 + $0x78] sm:$0xff]  ;;  %v4862_v30 = vld [vmem:[%s4666_s9 + $0x80] sm:$0xff]  ;;  %3953 = vmatmul.mubr.msk.f32.gmra.mxu0 %vm398_vm2, %v4824_v62  ;;  %v4877_v37 = vsel %vm316_vm1, %v333_v57, %v335_v63  ;;  %v4887_v50 = vsel %vm316_vm1, %v337_v1, %v338_v12 }
  0x2b   : > { %v4867_v31 = vld [vmem:[%s4666_s9 + $0x138] sm:$0xff]  ;;  %v4870_v32 = vld [vmem:[%s4666_s9 + $0x140] sm:$0xff]  ;;  %3977 = vmatmul.mubr.msk.f32.gmra.mxu1 %vm398_vm2, %v4840_v7  ;;  %3955 = vmatprep.mubr.msk.f32.mxu0 %vm398_vm2, %v4843_v9  ;;  %6639 = vst [vmem:[#allocation20_spill] sm:$0xff] %v4877_v37  ;;  %v340_v38 = vrot.slane %v4848_v15, 1  ;;  %v380_v40 = vrot.slane %v4851_v16, 1  ;;  %v4884_v45 = vsel %vm316_vm1, %v373_v59, %v375_v11  ;;  %6641 = vst [vmem:[#allocation22_spill] sm:$0xff] %v4887_v50 }
  0x2c   : > { %3979 = vmatprep.mubr.msk.f32.mxu1 %vm398_vm2, %v4854_v18  ;;  %6640 = vst [vmem:[#allocation21_spill] sm:$0xff] %v4884_v45  ;;  %v342_v51 = vrot.slane %v4859_v25, 1  ;;  %v343_v52 = vrot.slane %v4862_v30, 1  ;;  %v4892_v57 = vld [vmem:[%s4666_s9 + $0x88] sm:$0x3]  ;;  %v4898_v63 = vsel %vm316_vm1, %v377_v23, %v378_v24  ;;  %v382_v7 = vrot.slane %v4867_v31, 1 }
  0x2d   : > { %v4895_v58 = vld [vmem:[%s4666_s9 + $0x148] sm:$0x3]  ;;  %6642 = vst [vmem:[#allocation23_spill] sm:$0xff] %v4898_v63  ;;  %v383_v18 = vrot.slane %v4870_v32, 1  ;;  %v4903_v59 = vld [vmem:[%s4666_s9 + $0x90] sm:$0xff]  ;;  %v4906_v1 = vld [vmem:[%s4666_s9 + $0x98] sm:$0xff]  ;;  %v4921_v23 = vsel %vm316_vm1, %v338_v12, %v340_v38  ;;  %v4928_v29 = vsel %vm316_vm1, %v378_v24, %v380_v40 }
  0x2e   : > { %3956 = vmatmul.mubr.msk.f32.gmra.mxu0 %vm398_vm2, %v4877_v37  ;;  %v4911_v11 = vld [vmem:[%s4666_s9 + $0x150] sm:$0xff]  ;;  %v4914_v56 = vld [vmem:[%s4666_s9 + $0x158] sm:$0xff]  ;;  %6644 = vst [vmem:[#allocation25_spill] sm:$0xff] %v4921_v23  ;;  %v345_v44 = vrot.slane %v4892_v57, 1  ;;  %v385_v42 = vrot.slane %v4895_v58, 1  ;;  %6645 = vst [vmem:[#allocation26_spill] sm:$0xff] %v4928_v29 }
  0x2f   : > { %6643 = vst [vmem:[#allocation24_spill] sm:$0xff] %v4914_v56  ;;  %3980 = vmatmul.mubr.msk.f32.gmra.mxu1 %vm398_vm2, %v4884_v45  ;;  %3958 = vmatprep.mubr.msk.f32.mxu0 %vm398_vm2, %v4887_v50  ;;  %v4931_v45 = vsel %vm316_vm1, %v342_v51, %v343_v52  ;;  %v347_v22 = vrot.slane %v4903_v59, 1  ;;  %v348_v12 = vrot.slane %v4906_v1, 1  ;;  %v4936_v38 = vld [vmem:[%s4666_s9 + $0xa0] sm:$0x3]  ;;  %v4939_v50 = vsel %vm316_vm1, %v382_v7, %v383_v18  ;;  %v4947_v24 = vld [vmem:[%s4666_s9 + $0xa8] sm:$0xff] }
  0x30   : > { %3982 = vmatprep.mubr.msk.f32.mxu1 %vm398_vm2, %v4898_v63  ;;  %6646 = vst [vmem:[#allocation27_spill] sm:$0xff] %v4931_v45  ;;  %6647 = vst [vmem:[#allocation28_spill] sm:$0xff] %v4939_v50  ;;  %v387_v37 = vrot.slane %v4911_v11, 1  ;;  %v388_v9 = vrot.slane %v4914_v56, 1  ;;  %v4944_v63 = vld [vmem:[%s4666_s9 + $0x160] sm:$0x3]  ;;  %v4965_v7 = vsel %vm316_vm1, %v343_v52, %v345_v44  ;;  %v4968_v49 = vsel %vm316_vm1, %v383_v18, %v385_v42 }
  0x31   : > { %v4950_v40 = vld [vmem:[%s4666_s9 + $0xb0] sm:$0xff]  ;;  %v4955_v51 = vld [vmem:[%s4666_s9 + $0x168] sm:$0xff]  ;;  %6649 = vst [vmem:[#allocation30_spill] sm:$0xff] %v4965_v7  ;;  %6650 = vst [vmem:[#allocation31_spill] sm:$0xff] %v4968_v49  ;;  %v350_v43 = vrot.slane %v4936_v38, 1  ;;  %v390_v36 = vrot.slane %v4944_v63, 1 }
  0x32   : > { %3959 = vmatmul.mubr.msk.f32.gmra.mxu0 %vm398_vm2, %v4921_v23  ;;  %v4958_v62 = vld [vmem:[%s4666_s9 + $0x170] sm:$0xff]  ;;  %v4974_v23 = vsel %vm316_vm1, %v347_v22, %v348_v12  ;;  %v4980_v56 = vld [vmem:[%s4666_s9 + $0xb8] sm:$0x3]  ;;  %v4983_v44 = vsel %vm316_vm1, %v387_v37, %v388_v9  ;;  %v392_v42 = vrot.slane %v4955_v51, 1  ;;  %s4465_s27 = scalar_lea.vmem %s4464_s26, 8192 }
  0x33   : > { %6648 = vst [vmem:[#allocation29_spill] sm:$0xff] %v4958_v62  ;;  %3983 = vmatmul.mubr.msk.f32.gmra.mxu1 %vm398_vm2, %v4928_v29  ;;  %3961 = vmatprep.mubr.msk.f32.mxu0 %vm398_vm2, %v4931_v45  ;;  %6651 = vst [vmem:[#allocation32_spill] sm:$0xff] %v4974_v23  ;;  %v352_v29 = vrot.slane %v4947_v24, 1  ;;  %v353_v45 = vrot.slane %v4950_v40, 1  ;;  %v393_v18 = vrot.slane %v4958_v62, 1  ;;  %v4997_v22 = vsel %vm316_vm1, %v348_v12, %v350_v43 }
  0x34   : > { %3985 = vmatprep.mubr.msk.f32.mxu1 %vm398_vm2, %v4939_v50  ;;  %6652 = vst [vmem:[#allocation33_spill] sm:$0xff] %v4983_v44  ;;  %v4988_v52 = vld [vmem:[%s4666_s9 + $0x178] sm:$0x3]  ;;  %6653 = vst [vmem:[#allocation34_spill] sm:$0xff] %v4997_v22  ;;  %v355_v37 = vrot.slane %v4980_v56, 1  ;;  %v985_v50 = vrot.slane %v4669_v3, 2  ;;  %v5004_v62 = vsel %vm316_vm1, %v388_v9, %v390_v36 }
  0x35   : > { %6654 = vst [vmem:[#allocation35_spill] sm:$0xff] %v5004_v62  ;;  %v5012_v43 = vsel %vm316_vm1, %v392_v42, %v393_v18  ;;  %v988_v12 = vrot.slane %v4684_v10, 2  ;;  %v990_v10 = vrot.slane %v4692_v14, 2  ;;  %v991_v42 = vrot.slane %v4697_v17, 2 }
  0x36   : > { %3962 = vmatmul.mubr.msk.f32.gmra.mxu0 %vm398_vm2, %v4965_v7  ;;  %v5007_v7 = vsel %vm316_vm1, %v352_v29, %v353_v45  ;;  %6656 = vst [vmem:[#allocation37_spill] sm:$0xff] %v5012_v43  ;;  %v5022_v29 = vsel %vm316_vm1, %v353_v45, %v355_v37  ;;  %v993_v37 = vrot.slane %v4719_v26, 2  ;;  %v998_v26 = vrot.slane %v4760_v41, 2 }
  0x37   : > { %3986 = vmatmul.mubr.msk.f32.gmra.mxu1 %vm398_vm2, %v4968_v49  ;;  %3964 = vmatprep.mubr.msk.f32.mxu0 %vm398_vm2, %v4974_v23  ;;  %6655 = vst [vmem:[#allocation36_spill] sm:$0xff] %v5007_v7  ;;  %v395_v49 = vrot.slane %v4988_v52, 1  ;;  %v986_v23 = vrot.slane %v4672_v4, 2  ;;  %6657 = vst [vmem:[#allocation38_spill] sm:$0xff] %v5022_v29  ;;  %v1003_v41 = vrot.slane %v4812_v60, 2 }
  0x38   : > { %3988 = vmatprep.mubr.msk.f32.mxu1 %vm398_vm2, %v4983_v44 }
  0x39   : > { %v5027_v36 = vsel %vm316_vm1, %v393_v18, %v395_v49  ;;  %v987_v9 = vsel %vm984_vm3, %v985_v50, %v986_v23  ;;  %v989_v45 = vsel %vm984_vm3, %v986_v23, %v988_v12  ;;  %v995_v49 = vrot.slane %v4739_v33, 2  ;;  %v5063_v23 = vld [vmem:[%s6540_s1 + $0x18] sm:$0xf] }
  0x3a   : > { %3965 = vmatmul.mubr.msk.f32.gmra.mxu0 %vm398_vm2, %v4997_v22  ;;  %6658 = vst [vmem:[#allocation39_spill] sm:$0xff] %v5027_v36  ;;  %v996_v50 = vrot.slane %v4742_v34, 2  ;;  %v5045_v18 = vsel %vm984_vm3, %v990_v10, %v991_v42  ;;  %v1001_v12 = vrot.slane %v4782_v48, 2 }
  0x3b   : > { %3989 = vmatmul.mubr.msk.f32.gmra.mxu1 %vm398_vm2, %v5004_v62  ;;  %3967 = vmatprep.mubr.msk.f32.mxu0 %vm398_vm2, %v5007_v7 }
  0x3c   : > { %3991 = vmatprep.mubr.msk.f32.mxu1 %vm398_vm2, %v5012_v43  ;;  %v5104_v60 = vsel %vm984_vm3, %v1001_v12, %v1003_v41  ;;  %v1015_v41 = vrot.slane %v4903_v59, 2 }
  0x3e   : > { %3968 = vmatmul.mubr.msk.f32.gmra.mxu0 %vm398_vm2, %v5022_v29 }
  0x3f   : > { %3992 = vmatmul.mubr.msk.f32.gmra.mxu1 %vm398_vm2, %v5027_v36  ;;  %4046 = vmatprep.mubr.msk.f32.mxu0 %vm398_vm2, %v987_v9  ;;  %v5050_v9 = vld [vmem:[%s6540_s1 + $0x14] sm:$0xf] }
  0x40   : > { %3996 = vmatprep.mubr.msk.f32.mxu1 %vm398_vm2, %v4669_v3  ;;  %v5057_v3 = vsel %vm984_vm3, %v991_v42, %v993_v37  ;;  %v1005_v42 = vrot.slane %v4799_v55, 2  ;;  %v1008_v37 = vrot.slane %v4848_v15, 2 }
  0x42   : > { %4047 = vmatmul.mubr.msk.f32.vlgmr.msra.gmra.mxu0 %vm398_vm2, %v989_v45  ;;  %v1006_v45 = vrot.slane %v4815_v61, 2 }
  0x43   : > { %3997 = vmatmul.mubr.msk.f32.vlgmr.msra.gmra.mxu1 %vm398_vm2, %v4672_v4  ;;  %4145 = vmatpush3.msk.msra.mxu0 %vm463_vm0, %v4727_v28  ;;  %v5070_v4 = vsel %vm984_vm3, %v995_v49, %v996_v50  ;;  %v1000_v28 = vrot.slane %v4779_v47, 2 }
  0x44   : > { %4095 = vmatpush3.msk.msra.mxu1 %vm463_vm0, %v4709_v21  ;;  %3999 = vmatprep.mubr.msk.f32.mxu1 %vm398_vm2, %v4692_v14  ;;  %v5087_v21 = vsel %vm984_vm3, %v996_v50, %v998_v26  ;;  %v5110_v49 = vsel %vm984_vm3, %v1005_v42, %v1006_v45  ;;  %v1010_v50 = vrot.slane %v4859_v25, 2  ;;  %v1011_v26 = vrot.slane %v4862_v30, 2 }
  0x45   : > { %4049 = vmatprep.mubr.msk.f32.mxu0 %vm398_vm2, %v5045_v18  ;;  %4194 = vmatprep.subr.msk.mxu1 %vm463_vm0, %v5050_v9  ;;  %v5093_v10 = vsel %vm984_vm3, %v1000_v28, %v1001_v12  ;;  %v5121_v15 = vsel %vm984_vm3, %v1006_v45, %v1008_v37  ;;  %v1013_v28 = vrot.slane %v4892_v57, 2  ;;  %v1016_v42 = vrot.slane %v4906_v1, 2 }
  0x46   : > { %4050 = vmatmul.mubr.msk.f32.gmra.mxu0 %vm398_vm2, %v5057_v3  ;;  %4244 = vmatprep.subr.msk.mxu0 %vm463_vm0, %v5063_v23  ;;  %6659 = vst [vmem:[#allocation40_spill] sm:$0xff] %v5121_v15  ;;  %v5127_v12 = vsel %vm984_vm3, %v1010_v50, %v1011_v26  ;;  %v1018_v45 = vrot.slane %v4936_v38, 2  ;;  %v1020_v50 = vrot.slane %v4947_v24, 2 }
  0x47   : > { %4000 = vmatmul.mubr.msk.f32.gmra.mxu1 %vm398_vm2, %v4697_v17  ;;  %4052 = vmatprep.mubr.msk.f32.mxu0 %vm398_vm2, %v5070_v4  ;;  %v5138_v57 = vsel %vm984_vm3, %v1011_v26, %v1013_v28  ;;  %v5144_v37 = vsel %vm984_vm3, %v1015_v41, %v1016_v42  ;;  %v1023_v26 = vrot.slane %v4980_v56, 2  ;;  %v1025_v41 = vrot.slane %v4675_v5, 2 }
  0x48   : > { %4002 = vmatprep.mubr.msk.f32.mxu1 %vm398_vm2, %v4739_v33  ;;  %6660 = vst [vmem:[#allocation41_spill] sm:$0xff] %v5138_v57  ;;  %v5155_v38 = vsel %vm984_vm3, %v1016_v42, %v1018_v45  ;;  %v1028_v42 = vrot.slane %v4689_v13, 2 }
  0x49   : > { %6661 = vst [vmem:[#allocation42_spill] sm:$0xff] %v5155_v38 }
  0x4a   : > { %4053 = vmatmul.mubr.msk.f32.gmra.mxu0 %vm398_vm2, %v5087_v21 }
  0x4b   : > { %4003 = vmatmul.mubr.msk.f32.gmra.mxu1 %vm398_vm2, %v4742_v34  ;;  %4055 = vmatprep.mubr.msk.f32.mxu0 %vm398_vm2, %v5093_v10 }
  0x4c   : > { %4005 = vmatprep.mubr.msk.f32.mxu1 %vm398_vm2, %v4779_v47 }
  0x4e   : > { %4056 = vmatmul.mubr.msk.f32.gmra.mxu0 %vm398_vm2, %v5104_v60 }
  0x4f   : > { %4006 = vmatmul.mubr.msk.f32.gmra.mxu1 %vm398_vm2, %v4782_v48  ;;  %4058 = vmatprep.mubr.msk.f32.mxu0 %vm398_vm2, %v5110_v49 }
  0x50   : > { %4008 = vmatprep.mubr.msk.f32.mxu1 %vm398_vm2, %v4799_v55 }
  0x52   : > { %4059 = vmatmul.mubr.msk.f32.gmra.mxu0 %vm398_vm2, %v5121_v15  ;;  %v1021_v15 = vrot.slane %v4950_v40, 2 }
  0x53   : > { %4009 = vmatmul.mubr.msk.f32.gmra.mxu1 %vm398_vm2, %v4815_v61  ;;  %4061 = vmatprep.mubr.msk.f32.mxu0 %vm398_vm2, %v5127_v12 }
  0x54   : > { %4011 = vmatprep.mubr.msk.f32.mxu1 %vm398_vm2, %v4859_v25  ;;  %v5161_v28 = vsel %vm984_vm3, %v1020_v50, %v1021_v15  ;;  %v5172_v56 = vsel %vm984_vm3, %v1021_v15, %v1023_v26  ;;  %v1030_v50 = vrot.slane %v4701_v19, 2  ;;  %v1033_v15 = vrot.slane %v4722_v27, 2 }
  0x55   : > { %6662 = vst [vmem:[#allocation43_spill] sm:$0xff] %v5172_v56 }
  0x56   : > { %4062 = vmatmul.mubr.msk.f32.gmra.mxu0 %vm398_vm2, %v5138_v57  ;;  %v1026_v57 = vrot.slane %v4680_v8, 2 }
  0x57   : > { %4012 = vmatmul.mubr.msk.f32.gmra.mxu1 %vm398_vm2, %v4862_v30  ;;  %4064 = vmatprep.mubr.msk.f32.mxu0 %vm398_vm2, %v5144_v37 }
  0x58   : > { %4014 = vmatprep.mubr.msk.f32.mxu1 %vm398_vm2, %v4903_v59  ;;  %v5178_v45 = vsel %vm984_vm3, %v1025_v41, %v1026_v57  ;;  %v5189_v13 = vsel %vm984_vm3, %v1026_v57, %v1028_v42  ;;  %v1035_v41 = vrot.slane %v4745_v35, 2  ;;  %v1038_v57 = vrot.slane %v4776_v46, 2 }
  0x59   : > { %6663 = vst [vmem:[#allocation44_spill] sm:$0xff] %v5189_v13 }
  0x5a   : > { %4065 = vmatmul.mubr.msk.f32.gmra.mxu0 %vm398_vm2, %v5155_v38  ;;  %v1031_v38 = vrot.slane %v4704_v20, 2 }
  0x5b   : > { %4015 = vmatmul.mubr.msk.f32.gmra.mxu1 %vm398_vm2, %v4906_v1  ;;  %4067 = vmatprep.mubr.msk.f32.mxu0 %vm398_vm2, %v5161_v28 }
  0x5c   : > { %4017 = vmatprep.mubr.msk.f32.mxu1 %vm398_vm2, %v4947_v24  ;;  %v5195_v26 = vsel %vm984_vm3, %v1030_v50, %v1031_v38  ;;  %v5206_v27 = vsel %vm984_vm3, %v1031_v38, %v1033_v15  ;;  %v1040_v50 = vrot.slane %v4793_v53, 2  ;;  %v1043_v38 = vrot.slane %v4828_v0, 2 }
  0x5d   : > { %6664 = vst [vmem:[#allocation45_spill] sm:$0xff] %v5206_v27 }
  0x5e   : > { %4068 = vmatmul.mubr.msk.f32.gmra.mxu0 %vm398_vm2, %v5172_v56  ;;  %v1036_v56 = vrot.slane %v4756_v39, 2 }
  0x5f   : > { %4018 = vmatmul.mubr.msk.f32.gmra.mxu1 %vm398_vm2, %v4950_v40  ;;  %4070 = vmatprep.mubr.msk.f32.mxu0 %vm398_vm2, %v5178_v45 }
  0x60   : > { %4020 = vmatprep.mubr.msk.f32.mxu1 %vm398_vm2, %v4675_v5  ;;  %v5212_v42 = vsel %vm984_vm3, %v1035_v41, %v1036_v56  ;;  %v5223_v46 = vsel %vm984_vm3, %v1036_v56, %v1038_v57  ;;  %v1045_v41 = vrot.slane %v4832_v2, 2  ;;  %v1048_v56 = vrot.slane %v4851_v16, 2 }
  0x61   : > { %6665 = vst [vmem:[#allocation46_spill] sm:$0xff] %v5223_v46 }
  0x62   : > { %4071 = vmatmul.mubr.msk.f32.gmra.mxu0 %vm398_vm2, %v5189_v13  ;;  %v1041_v13 = vrot.slane %v4796_v54, 2 }
  0x63   : > { %4021 = vmatmul.mubr.msk.f32.gmra.mxu1 %vm398_vm2, %v4680_v8  ;;  %4073 = vmatprep.mubr.msk.f32.mxu0 %vm398_vm2, %v5195_v26 }
  0x64   : > { %4023 = vmatprep.mubr.msk.f32.mxu1 %vm398_vm2, %v4701_v19  ;;  %v5229_v15 = vsel %vm984_vm3, %v1040_v50, %v1041_v13  ;;  %v5240_v0 = vsel %vm984_vm3, %v1041_v13, %v1043_v38  ;;  %v1050_v50 = vrot.slane %v4867_v31, 2  ;;  %v1053_v13 = vrot.slane %v4895_v58, 2 }
  0x65   : > { %6666 = vst [vmem:[#allocation47_spill] sm:$0xff] %v5229_v15  ;;  %6667 = vst [vmem:[#allocation48_spill] sm:$0xff] %v5240_v0 }
  0x66   : > { %4074 = vmatmul.mubr.msk.f32.gmra.mxu0 %vm398_vm2, %v5206_v27  ;;  %v1046_v27 = vrot.slane %v4835_v6, 2 }
  0x67   : > { %4024 = vmatmul.mubr.msk.f32.gmra.mxu1 %vm398_vm2, %v4704_v20  ;;  %4076 = vmatprep.mubr.msk.f32.mxu0 %vm398_vm2, %v5212_v42 }
  0x68   : > { %4026 = vmatprep.mubr.msk.f32.mxu1 %vm398_vm2, %v4745_v35  ;;  %v5246_v57 = vsel %vm984_vm3, %v1045_v41, %v1046_v27  ;;  %v5257_v16 = vsel %vm984_vm3, %v1046_v27, %v1048_v56  ;;  %v1055_v41 = vrot.slane %v4911_v11, 2  ;;  %v1058_v27 = vrot.slane %v4944_v63, 2 }
  0x69   : > { %6668 = vst [vmem:[#allocation49_spill] sm:$0xff] %v5246_v57  ;;  %6669 = vst [vmem:[#allocation50_spill] sm:$0xff] %v5257_v16 }
  0x6a   : > { %4077 = vmatmul.mubr.msk.f32.gmra.mxu0 %vm398_vm2, %v5223_v46  ;;  %v1051_v46 = vrot.slane %v4870_v32, 2 }
  0x6b   : > { %4027 = vmatmul.mubr.msk.f32.gmra.mxu1 %vm398_vm2, %v4756_v39  ;;  %4079 = vmatprep.mubr.msk.f32.mxu0 %vm398_vm2, %v5229_v15 }
  0x6c   : > { %4029 = vmatprep.mubr.msk.f32.mxu1 %vm398_vm2, %v4793_v53  ;;  %v5263_v38 = vsel %vm984_vm3, %v1050_v50, %v1051_v46  ;;  %v5274_v58 = vsel %vm984_vm3, %v1051_v46, %v1053_v13  ;;  %v1060_v50 = vrot.slane %v4955_v51, 2  ;;  %v1063_v46 = vrot.slane %v4988_v52, 2  ;;  %v6673_v52 = vld [vmem:[#allocation10_spill] sm:$0xff] }
  0x6e   : > { %4080 = vmatmul.mubr.msk.f32.gmra.mxu0 %vm398_vm2, %v5240_v0  ;;  %v6670_v0 = vld [vmem:[#allocation24_spill] sm:$0xff] }
  0x6f   : > { %4030 = vmatmul.mubr.msk.f32.gmra.mxu1 %vm398_vm2, %v4796_v54  ;;  %4082 = vmatprep.mubr.msk.f32.mxu0 %vm398_vm2, %v5246_v57  ;;  %v1056_v15 = vrot.slane %v6670_v0, 2 }
  0x70   : > { %4032 = vmatprep.mubr.msk.f32.mxu1 %vm398_vm2, %v4832_v2 }
  0x71   : > { %v5280_v56 = vsel %vm984_vm3, %v1055_v41, %v1056_v15  ;;  %v5291_v63 = vsel %vm984_vm3, %v1056_v15, %v1058_v27  ;;  %v6674_v41 = vld [vmem:[#allocation12_spill] sm:$0xff]  ;;  %v5332_v27 = vld [vmem:[%s6540_s1 + $0x20] sm:$0xf] }
  0x72   : > { %4083 = vmatmul.mubr.msk.f32.gmra.mxu0 %vm398_vm2, %v5257_v16  ;;  %v6671_v16 = vld [vmem:[#allocation29_spill] sm:$0xff] }
  0x73   : > { %4033 = vmatmul.mubr.msk.f32.gmra.mxu1 %vm398_vm2, %v4835_v6  ;;  %4085 = vmatprep.mubr.msk.f32.mxu0 %vm398_vm2, %v5263_v38  ;;  %v1061_v57 = vrot.slane %v6671_v16, 2 }
  0x74   : > { %4035 = vmatprep.mubr.msk.f32.mxu1 %vm398_vm2, %v4867_v31 }
  0x75   : > { %v5297_v13 = vsel %vm984_vm3, %v1060_v50, %v1061_v57  ;;  %v5306_v15 = vsel %vm984_vm3, %v1061_v57, %v1063_v46  ;;  %v5323_v57 = vld [vmem:[%s6540_s1 + $0x1c] sm:$0xf]  ;;  %v6679_v50 = vld [vmem:[#allocation22_spill] sm:$0xff]  ;;  %v6680_v46 = vld [vmem:[#allocation25_spill] sm:$0xff] }
  0x76   : > { %4086 = vmatmul.mubr.msk.f32.gmra.mxu0 %vm398_vm2, %v5274_v58  ;;  %6672 = vst [vmem:[#allocation24_spill] sm:$0xff] %v5306_v15 }
  0x77   : > { %4036 = vmatmul.mubr.msk.f32.gmra.mxu1 %vm398_vm2, %v4870_v32  ;;  %4088 = vmatprep.mubr.msk.f32.mxu0 %vm398_vm2, %v5280_v56 }
  0x78   : > { %4038 = vmatprep.mubr.msk.f32.mxu1 %vm398_vm2, %v4911_v11 }
  0x7a   : > { %4089 = vmatmul.mubr.msk.f32.gmra.mxu0 %vm398_vm2, %v5291_v63 }
  0x7b   : > { %4039 = vmatmul.mubr.msk.f32.gmra.mxu1 %vm398_vm2, %v6670_v0  ;;  %4091 = vmatprep.mubr.msk.f32.mxu0 %vm398_vm2, %v5297_v13 }
  0x7c   : > { %4041 = vmatprep.mubr.msk.f32.mxu1 %vm398_vm2, %v4955_v51 }
  0x7e   : > { %4092 = vmatmul.mubr.msk.f32.gmra.mxu0 %vm398_vm2, %v5306_v15 }
  0x7f   : > { %4042 = vmatmul.mubr.msk.f32.gmra.mxu1 %vm398_vm2, %v6671_v16  ;;  %4146 = vmatprep.mubr.msk.f32.mxu0 %vm398_vm2, %v6673_v52  ;;  %v6681_v52 = vld [vmem:[#allocation27_spill] sm:$0xff] }
  0x80   : > { %4096 = vmatprep.mubr.msk.f32.mxu1 %vm398_vm2, %v4692_v14  ;;  %v6675_v14 = vld [vmem:[#allocation14_spill] sm:$0xff] }
  0x82   : > { %4147 = vmatmul.mubr.msk.f32.vlgmr.msra.gmra.mxu0 %vm398_vm2, %v6674_v41  ;;  %v6682_v41 = vld [vmem:[#allocation30_spill] sm:$0xff] }
  0x83   : > { %4097 = vmatmul.mubr.msk.f32.vlgmr.msra.gmra.mxu1 %vm398_vm2, %v4697_v17  ;;  %4245 = vmatpush3.msk.msra.mxu0 %vm463_vm0, %v5063_v23  ;;  %v6676_v17 = vld [vmem:[#allocation16_spill] sm:$0xff]  ;;  %v6677_v23 = vld [vmem:[#allocation18_spill] sm:$0xff] }
  0x84   : > { %4195 = vmatpush3.msk.msra.mxu1 %vm463_vm0, %v5050_v9  ;;  %4099 = vmatprep.mubr.msk.f32.mxu1 %vm398_vm2, %v4739_v33  ;;  %v6678_v9 = vld [vmem:[#allocation20_spill] sm:$0xff] }
  0x85   : > { %4149 = vmatprep.mubr.msk.f32.mxu0 %vm398_vm2, %v6675_v14  ;;  %4294 = vmatprep.subr.msk.mxu1 %vm463_vm0, %v5323_v57 }
  0x86   : > { %4150 = vmatmul.mubr.msk.f32.gmra.mxu0 %vm398_vm2, %v6676_v17  ;;  %4344 = vmatprep.subr.msk.mxu0 %vm463_vm0, %v5332_v27 }
  0x87   : > { %4100 = vmatmul.mubr.msk.f32.gmra.mxu1 %vm398_vm2, %v4742_v34  ;;  %4152 = vmatprep.mubr.msk.f32.mxu0 %vm398_vm2, %v6677_v23 }
  0x88   : > { %4102 = vmatprep.mubr.msk.f32.mxu1 %vm398_vm2, %v4779_v47 }
  0x8a   : > { %4153 = vmatmul.mubr.msk.f32.gmra.mxu0 %vm398_vm2, %v6678_v9 }
  0x8b   : > { %4103 = vmatmul.mubr.msk.f32.gmra.mxu1 %vm398_vm2, %v4782_v48  ;;  %4155 = vmatprep.mubr.msk.f32.mxu0 %vm398_vm2, %v6679_v50  ;;  %v6683_v50 = vld [vmem:[#allocation32_spill] sm:$0xff] }
  0x8c   : > { %4105 = vmatprep.mubr.msk.f32.mxu1 %vm398_vm2, %v4799_v55 }
  0x8e   : > { %4156 = vmatmul.mubr.msk.f32.gmra.mxu0 %vm398_vm2, %v6680_v46 }
  0x8f   : > { %4106 = vmatmul.mubr.msk.f32.gmra.mxu1 %vm398_vm2, %v4815_v61  ;;  %4158 = vmatprep.mubr.msk.f32.mxu0 %vm398_vm2, %v6681_v52  ;;  %v5449_v52 = vld [vmem:[%s4666_s9 + $0x190] sm:$0x3] }
  0x90   : > { %4108 = vmatprep.mubr.msk.f32.mxu1 %vm398_vm2, %v4859_v25 }
  0x92   : > { %4159 = vmatmul.mubr.msk.f32.gmra.mxu0 %vm398_vm2, %v6682_v41  ;;  %v5436_v41 = vld [vmem:[%s4666_s9 + $0x188] sm:$0xff] }
  0x93   : > { %4109 = vmatmul.mubr.msk.f32.gmra.mxu1 %vm398_vm2, %v4862_v30  ;;  %4161 = vmatprep.mubr.msk.f32.mxu0 %vm398_vm2, %v6683_v50  ;;  %v6684_v50 = vld [vmem:[#allocation8_spill] sm:$0xff] }
  0x94   : > { %4111 = vmatprep.mubr.msk.f32.mxu1 %vm398_vm2, %v4903_v59 }
  0x96   : > { %4162 = vmatmul.mubr.msk.f32.gmra.mxu0 %vm398_vm2, %v4997_v22  ;;  %v6685_v22 = vld [vmem:[#allocation9_spill] sm:$0xff] }
  0x97   : > { %4112 = vmatmul.mubr.msk.f32.gmra.mxu1 %vm398_vm2, %v4906_v1  ;;  %4164 = vmatprep.mubr.msk.f32.mxu0 %vm398_vm2, %v5007_v7  ;;  %v6686_v7 = vld [vmem:[#allocation11_spill] sm:$0xff] }
  0x98   : > { %4114 = vmatprep.mubr.msk.f32.mxu1 %vm398_vm2, %v4947_v24 }
  0x9a   : > { %4165 = vmatmul.mubr.msk.f32.gmra.mxu0 %vm398_vm2, %v5022_v29  ;;  %v6687_v29 = vld [vmem:[#allocation13_spill] sm:$0xff] }
  0x9b   : > { %4115 = vmatmul.mubr.msk.f32.gmra.mxu1 %vm398_vm2, %v4950_v40  ;;  %4167 = vmatprep.mubr.msk.f32.mxu0 %vm398_vm2, %v6684_v50  ;;  %v6688_v50 = vld [vmem:[#allocation15_spill] sm:$0xff] }
  0x9c   : > { %4117 = vmatprep.mubr.msk.f32.mxu1 %vm398_vm2, %v4675_v5 }
  0x9e   : > { %4168 = vmatmul.mubr.msk.f32.gmra.mxu0 %vm398_vm2, %v6685_v22  ;;  %v6689_v22 = vld [vmem:[#allocation17_spill] sm:$0xff] }
  0x9f   : > { %4118 = vmatmul.mubr.msk.f32.gmra.mxu1 %vm398_vm2, %v4680_v8  ;;  %4170 = vmatprep.mubr.msk.f32.mxu0 %vm398_vm2, %v6686_v7  ;;  %v6690_v7 = vld [vmem:[#allocation19_spill] sm:$0xff] }
  0xa0   : > { %4120 = vmatprep.mubr.msk.f32.mxu1 %vm398_vm2, %v4701_v19 }
  0xa2   : > { %4171 = vmatmul.mubr.msk.f32.gmra.mxu0 %vm398_vm2, %v6687_v29  ;;  %v6691_v29 = vld [vmem:[#allocation21_spill] sm:$0xff] }
  0xa3   : > { %4121 = vmatmul.mubr.msk.f32.gmra.mxu1 %vm398_vm2, %v4704_v20  ;;  %4173 = vmatprep.mubr.msk.f32.mxu0 %vm398_vm2, %v6688_v50  ;;  %v6692_v50 = vld [vmem:[#allocation23_spill] sm:$0xff] }
  0xa4   : > { %4123 = vmatprep.mubr.msk.f32.mxu1 %vm398_vm2, %v4745_v35 }
  0xa6   : > { %4174 = vmatmul.mubr.msk.f32.gmra.mxu0 %vm398_vm2, %v6689_v22  ;;  %v6693_v22 = vld [vmem:[#allocation26_spill] sm:$0xff] }
  0xa7   : > { %4124 = vmatmul.mubr.msk.f32.gmra.mxu1 %vm398_vm2, %v4756_v39  ;;  %4176 = vmatprep.mubr.msk.f32.mxu0 %vm398_vm2, %v6690_v7  ;;  %v6694_v7 = vld [vmem:[#allocation28_spill] sm:$0xff] }
  0xa8   : > { %4126 = vmatprep.mubr.msk.f32.mxu1 %vm398_vm2, %v4793_v53 }
  0xaa   : > { %4177 = vmatmul.mubr.msk.f32.gmra.mxu0 %vm398_vm2, %v6691_v29  ;;  %v5433_v29 = vld [vmem:[%s4666_s9 + $0x180] sm:$0xff] }
  0xab   : > { %4127 = vmatmul.mubr.msk.f32.gmra.mxu1 %vm398_vm2, %v4796_v54  ;;  %4179 = vmatprep.mubr.msk.f32.mxu0 %vm398_vm2, %v6692_v50  ;;  %v6695_v50 = vld [vmem:[#allocation31_spill] sm:$0xff] }
  0xac   : > { %4129 = vmatprep.mubr.msk.f32.mxu1 %vm398_vm2, %v4832_v2 }
  0xae   : > { %4180 = vmatmul.mubr.msk.f32.gmra.mxu0 %vm398_vm2, %v6693_v22  ;;  %v1659_v22 = vrot.slane %v5436_v41, 1 }
  0xaf   : > { %4130 = vmatmul.mubr.msk.f32.gmra.mxu1 %vm398_vm2, %v4835_v6  ;;  %4182 = vmatprep.mubr.msk.f32.mxu0 %vm398_vm2, %v6694_v7  ;;  %v1658_v7 = vrot.slane %v5433_v29, 1 }
  0xb0   : > { %4132 = vmatprep.mubr.msk.f32.mxu1 %vm398_vm2, %v4867_v31 }
  0xb2   : > { %4183 = vmatmul.mubr.msk.f32.gmra.mxu0 %vm398_vm2, %v6695_v50  ;;  %v5461_v50 = vsel %vm316_vm1, %v1658_v7, %v1659_v22 }
  0xb3   : > { %4133 = vmatmul.mubr.msk.f32.gmra.mxu1 %vm398_vm2, %v4870_v32  ;;  %4185 = vmatprep.mubr.msk.f32.mxu0 %vm398_vm2, %v4983_v44  ;;  %v1661_v44 = vrot.slane %v5449_v52, 1  ;;  %6696 = vst [vmem:[#allocation29_spill] sm:$0xff] %v5461_v50 }
  0xb4   : > { %4135 = vmatprep.mubr.msk.f32.mxu1 %vm398_vm2, %v4911_v11 }
  0xb6   : > { %4186 = vmatmul.mubr.msk.f32.gmra.mxu0 %vm398_vm2, %v5004_v62  ;;  %v5470_v62 = vsel %vm316_vm1, %v1659_v22, %v1661_v44  ;;  %v6708_v22 = vld [vmem:[#allocation50_spill] sm:$0xff] }
  0xb7   : > { %4136 = vmatmul.mubr.msk.f32.gmra.mxu1 %vm398_vm2, %v6670_v0  ;;  %4188 = vmatprep.mubr.msk.f32.mxu0 %vm398_vm2, %v5012_v43  ;;  %6697 = vst [vmem:[#allocation10_spill] sm:$0xff] %v5470_v62 }
  0xb8   : > { %4138 = vmatprep.mubr.msk.f32.mxu1 %vm398_vm2, %v4955_v51 }
  0xba   : > { %4189 = vmatmul.mubr.msk.f32.gmra.mxu0 %vm398_vm2, %v5027_v36  ;;  %v5647_v36 = vld [vmem:[%s4666_s9 + $0x198] sm:$0xff] }
  0xbb   : > { %4139 = vmatmul.mubr.msk.f32.gmra.mxu1 %vm398_vm2, %v6671_v16  ;;  %4191 = vmatprep.mubr.msk.f32.mxu0 %vm398_vm2, %v5461_v50 }
  0xbc   : > { %4141 = vmatprep.mubr.msk.f32.mxu1 %vm398_vm2, %v5433_v29 }
  0xbe   : > { %4192 = vmatmul.mubr.msk.f32.gmra.mxu0 %vm398_vm2, %v5470_v62 }
  0xbf   : > { %4142 = vmatmul.mubr.msk.f32.gmra.mxu1 %vm398_vm2, %v5436_v41  ;;  %4246 = vmatprep.mubr.msk.f32.mxu0 %vm398_vm2, %v4739_v33  ;;  %v6698_v33 = vld [vmem:[#allocation40_spill] sm:$0xff] }
  0xc0   : > { %4196 = vmatprep.mubr.msk.f32.mxu1 %vm398_vm2, %v5045_v18 }
  0xc2   : > { %4247 = vmatmul.mubr.msk.f32.vlgmr.msra.gmra.mxu0 %vm398_vm2, %v4742_v34  ;;  %v6699_v34 = vld [vmem:[#allocation41_spill] sm:$0xff] }
  0xc3   : > { %4197 = vmatmul.mubr.msk.f32.vlgmr.msra.gmra.mxu1 %vm398_vm2, %v5057_v3  ;;  %4345 = vmatpush3.msk.msra.mxu0 %vm463_vm0, %v5332_v27 }
  0xc4   : > { %4295 = vmatpush3.msk.msra.mxu1 %vm463_vm0, %v5323_v57  ;;  %4199 = vmatprep.mubr.msk.f32.mxu1 %vm398_vm2, %v5070_v4  ;;  %v1928_v57 = vrot.slane %v5433_v29, 2 }
  0xc5   : > { %4249 = vmatprep.mubr.msk.f32.mxu0 %vm398_vm2, %v4779_v47  ;;  %v6700_v47 = vld [vmem:[#allocation42_spill] sm:$0xff] }
  0xc6   : > { %4250 = vmatmul.mubr.msk.f32.gmra.mxu0 %vm398_vm2, %v4782_v48  ;;  %v6701_v48 = vld [vmem:[#allocation43_spill] sm:$0xff] }
  0xc7   : > { %4200 = vmatmul.mubr.msk.f32.gmra.mxu1 %vm398_vm2, %v5087_v21  ;;  %4252 = vmatprep.mubr.msk.f32.mxu0 %vm398_vm2, %v4799_v55  ;;  %v6702_v55 = vld [vmem:[#allocation44_spill] sm:$0xff] }
  0xc8   : > { %4202 = vmatprep.mubr.msk.f32.mxu1 %vm398_vm2, %v5093_v10 }
  0xca   : > { %4253 = vmatmul.mubr.msk.f32.gmra.mxu0 %vm398_vm2, %v4815_v61 }
  0xcb   : > { %4203 = vmatmul.mubr.msk.f32.gmra.mxu1 %vm398_vm2, %v5104_v60  ;;  %4255 = vmatprep.mubr.msk.f32.mxu0 %vm398_vm2, %v4859_v25  ;;  %v6704_v25 = vld [vmem:[#allocation46_spill] sm:$0xff] }
  0xcc   : > { %4205 = vmatprep.mubr.msk.f32.mxu1 %vm398_vm2, %v5110_v49 }
  0xce   : > { %4256 = vmatmul.mubr.msk.f32.gmra.mxu0 %vm398_vm2, %v4862_v30  ;;  %v6705_v30 = vld [vmem:[#allocation47_spill] sm:$0xff] }
  0xcf   : > { %4206 = vmatmul.mubr.msk.f32.gmra.mxu1 %vm398_vm2, %v6698_v33  ;;  %4258 = vmatprep.mubr.msk.f32.mxu0 %vm398_vm2, %v4903_v59 }
  0xd0   : > { %4208 = vmatprep.mubr.msk.f32.mxu1 %vm398_vm2, %v5127_v12 }
  0xd2   : > { %4259 = vmatmul.mubr.msk.f32.gmra.mxu0 %vm398_vm2, %v4906_v1 }
  0xd3   : > { %4209 = vmatmul.mubr.msk.f32.gmra.mxu1 %vm398_vm2, %v6699_v34  ;;  %4261 = vmatprep.mubr.msk.f32.mxu0 %vm398_vm2, %v4947_v24  ;;  %v6706_v24 = vld [vmem:[#allocation48_spill] sm:$0xff] }
  0xd4   : > { %4211 = vmatprep.mubr.msk.f32.mxu1 %vm398_vm2, %v5144_v37 }
  0xd6   : > { %4262 = vmatmul.mubr.msk.f32.gmra.mxu0 %vm398_vm2, %v4950_v40  ;;  %v6707_v40 = vld [vmem:[#allocation49_spill] sm:$0xff] }
  0xd7   : > { %4212 = vmatmul.mubr.msk.f32.gmra.mxu1 %vm398_vm2, %v6700_v47  ;;  %4264 = vmatprep.mubr.msk.f32.mxu0 %vm398_vm2, %v4675_v5 }
  0xd8   : > { %4214 = vmatprep.mubr.msk.f32.mxu1 %vm398_vm2, %v5161_v28 }
  0xda   : > { %4265 = vmatmul.mubr.msk.f32.gmra.mxu0 %vm398_vm2, %v4680_v8 }
  0xdb   : > { %4215 = vmatmul.mubr.msk.f32.gmra.mxu1 %vm398_vm2, %v6701_v48  ;;  %4267 = vmatprep.mubr.msk.f32.mxu0 %vm398_vm2, %v4701_v19  ;;  %v6703_v19 = vld [vmem:[#allocation45_spill] sm:$0xff] }
  0xdc   : > { %4217 = vmatprep.mubr.msk.f32.mxu1 %vm398_vm2, %v5178_v45 }
  0xde   : > { %4268 = vmatmul.mubr.msk.f32.gmra.mxu0 %vm398_vm2, %v4704_v20 }
  0xdf   : > { %4218 = vmatmul.mubr.msk.f32.gmra.mxu1 %vm398_vm2, %v6702_v55  ;;  %4270 = vmatprep.mubr.msk.f32.mxu0 %vm398_vm2, %v4745_v35 }
  0xe0   : > { %4220 = vmatprep.mubr.msk.f32.mxu1 %vm398_vm2, %v5195_v26 }
  0xe2   : > { %v5550_v5 = vpop.f32.mrf.mxu0  ;;  %4271 = vmatmul.mubr.msk.f32.gmra.mxu0 %vm398_vm2, %v4756_v39 }
  0xe3   : > { %v5554_v8 = vpop.f32.mrf.mxu1  ;;  %4221 = vmatmul.mubr.msk.f32.gmra.mxu1 %vm398_vm2, %v6703_v19  ;;  %4273 = vmatprep.mubr.msk.f32.mxu0 %vm398_vm2, %v4793_v53 }
  0xe4   : > { %v5560_v20 = vpop.f32.mrf.mxu0  ;;  %4223 = vmatprep.mubr.msk.f32.mxu1 %vm398_vm2, %v5212_v42 }
  0xe5   : > { %v5564_v35 = vpop.f32.mrf.mxu1 }
  0xe6   : > { %v5566_v61 = vpop.f32.mrf.mxu0  ;;  %4274 = vmatmul.mubr.msk.f32.gmra.mxu0 %vm398_vm2, %v4796_v54 }
  0xe7   : > { %v5570_v39 = vpop.f32.mrf.mxu1  ;;  %4224 = vmatmul.mubr.msk.f32.gmra.mxu1 %vm398_vm2, %v6704_v25  ;;  %4276 = vmatprep.mubr.msk.f32.mxu0 %vm398_vm2, %v4832_v2 }
  0xe8   : > { %v5576_v53 = vpop.f32.mrf.mxu0  ;;  %4226 = vmatprep.mubr.msk.f32.mxu1 %vm398_vm2, %v6705_v30 }
  0xe9   : > { %v5580_v59 = vpop.f32.mrf.mxu1 }
  0xea   : > { %v5582_v1 = vpop.f32.mrf.mxu0  ;;  %4277 = vmatmul.mubr.msk.f32.gmra.mxu0 %vm398_vm2, %v4835_v6 }
  0xeb   : > { %v5586_v54 = vpop.f32.mrf.mxu1  ;;  %4227 = vmatmul.mubr.msk.f32.gmra.mxu1 %vm398_vm2, %v6706_v24  ;;  %4279 = vmatprep.mubr.msk.f32.mxu0 %vm398_vm2, %v4867_v31 }
  0xec   : > { %v5592_v2 = vpop.f32.mrf.mxu0  ;;  %4229 = vmatprep.mubr.msk.f32.mxu1 %vm398_vm2, %v6707_v40 }
  0xed   : > { %v5596_v7 = vpop.f32.mrf.mxu1 }
  0xee   : > { %v5598_v44 = vpop.f32.mrf.mxu0  ;;  %4280 = vmatmul.mubr.msk.f32.gmra.mxu0 %vm398_vm2, %v4870_v32 }
  0xef   : > { %v5602_v6 = vpop.f32.mrf.mxu1  ;;  %4230 = vmatmul.mubr.msk.f32.gmra.mxu1 %vm398_vm2, %v6708_v22  ;;  %4282 = vmatprep.mubr.msk.f32.mxu0 %vm398_vm2, %v4911_v11 }
  0xf0   : > { %v5608_v31 = vpop.f32.mrf.mxu0  ;;  %4232 = vmatprep.mubr.msk.f32.mxu1 %vm398_vm2, %v5263_v38 }
  0xf1   : > { %v5612_v18 = vpop.f32.mrf.mxu1 }
  0xf2   : > { %v5614_v3 = vpop.f32.mrf.mxu0  ;;  %4283 = vmatmul.mubr.msk.f32.gmra.mxu0 %vm398_vm2, %v6670_v0  ;;  %v1929_v0 = vrot.slane %v5436_v41, 2 }
  0xf3   : > { %v5618_v32 = vpop.f32.mrf.mxu1  ;;  %4233 = vmatmul.mubr.msk.f32.gmra.mxu1 %vm398_vm2, %v5274_v58  ;;  %4285 = vmatprep.mubr.msk.f32.mxu0 %vm398_vm2, %v4955_v51 }
  0xf4   : > { %6709 = vst [vmem:[#allocation12_spill] sm:$0xff] %v5618_v32  ;;  %v5624_v11 = vpop.f32.mrf.mxu0  ;;  %4235 = vmatprep.mubr.msk.f32.mxu1 %vm398_vm2, %v5280_v56  ;;  %v5666_v32 = vld [vmem:[%s4666_s9 + $0x1a0] sm:$0xff] }
  0xf5   : > { %v5629_v27 = vpop.f32.mrf.mxu1 }
  0xf6   : > { %6710 = vst [vmem:[#allocation14_spill] sm:$0xff] %v5629_v27  ;;  %v5632_v62 = vpop.f32.mrf.mxu0  ;;  %4286 = vmatmul.mubr.msk.f32.gmra.mxu0 %vm398_vm2, %v6671_v16  ;;  %v1931_v27 = vrot.slane %v5449_v52, 2  ;;  %v5653_v16 = vsel %vm984_vm3, %v1928_v57, %v1929_v0 }
  0xf7   : > { %v5636_v50 = vpop.f32.mrf.mxu1  ;;  %4236 = vmatmul.mubr.msk.f32.gmra.mxu1 %vm398_vm2, %v5291_v63  ;;  %4288 = vmatprep.mubr.msk.f32.mxu0 %vm398_vm2, %v5433_v29  ;;  %6713 = vst [vmem:[#allocation20_spill] sm:$0xff] %v5653_v16 }
  0xf8   : > { %6711 = vst [vmem:[#allocation16_spill] sm:$0xff] %v5636_v50  ;;  %v5642_v51 = vpop.f32.mrf.mxu0  ;;  %4238 = vmatprep.mubr.msk.f32.mxu1 %vm398_vm2, %v5297_v13  ;;  %v5673_v57 = vsel %vm984_vm3, %v1929_v0, %v1931_v27 }
  0xf9   : > { %v5650_v43 = vpop.f32.mrf.mxu1  ;;  %6715 = vst [vmem:[#allocation40_spill] sm:$0xff] %v5673_v57 }
  0xfa   : > { %6712 = vst [vmem:[#allocation18_spill] sm:$0xff] %v5650_v43  ;;  %v5655_v50 = vpop.f32.mrf.mxu0  ;;  %4289 = vmatmul.mubr.msk.f32.gmra.mxu0 %vm398_vm2, %v5436_v41 }
  0xfb   : > { %v5659_v29 = vpop.f32.mrf.mxu1  ;;  %4239 = vmatmul.mubr.msk.f32.gmra.mxu1 %vm398_vm2, %v5306_v15  ;;  %4291 = vmatprep.mubr.msk.f32.mxu0 %vm398_vm2, %v5647_v36 }
  0xfc   : > { %6714 = vst [vmem:[#allocation25_spill] sm:$0xff] %v5659_v29  ;;  %v5668_v52 = vpop.f32.mrf.mxu0  ;;  %4241 = vmatprep.mubr.msk.f32.mxu1 %vm398_vm2, %v5653_v16 }
  0xfd   : > { %v5675_v43 = vpop.f32.mrf.mxu1 }
  0xfe   : > { %6716 = vst [vmem:[#allocation41_spill] sm:$0xff] %v5675_v43  ;;  %v5677_v41 = vpop.f32.mrf.mxu0  ;;  %4292 = vmatmul.mubr.msk.f32.gmra.mxu0 %vm398_vm2, %v5666_v32 }
  0xff   : > { %v5681_v29 = vpop.f32.mrf.mxu1  ;;  %4242 = vmatmul.mubr.msk.f32.gmra.mxu1 %vm398_vm2, %v5673_v57  ;;  %4346 = vmatprep.mubr.msk.f32.mxu0 %vm398_vm2, %v5070_v4 }
 0x100   : > { %6717 = vst [vmem:[#allocation42_spill] sm:$0xff] %v5681_v29  ;;  %v5687_v15 = vpop.f32.mrf.mxu0  ;;  %4296 = vmatprep.mubr.msk.f32.mxu1 %vm398_vm2, %v6675_v14 }
 0x101   : > { %v5691_v27 = vpop.f32.mrf.mxu1 }
 0x102   : > { %6718 = vst [vmem:[#allocation43_spill] sm:$0xff] %v5691_v27  ;;  %v4048_v0 = vpop.f32.mrf.mxu0  ;;  %4347 = vmatmul.mubr.msk.f32.vlgmr.msra.gmra.mxu0 %vm398_vm2, %v5087_v21 }
 0x103   : > { %v3998_v43 = vpop.f32.mrf.mxu1  ;;  %4297 = vmatmul.mubr.msk.f32.vlgmr.msra.gmra.mxu1 %vm398_vm2, %v6676_v17  ;;  %4349 = vmatprep.mubr.msk.f32.mxu0 %vm398_vm2, %v5093_v10 }
 0x104   : > { %v831_v4 = vadd.f32 %v3998_v43, %v5550_v5  ;;  %v1199_v29 = vpop.f32.mrf.mxu0  ;;  %4299 = vmatprep.mubr.msk.f32.mxu1 %vm398_vm2, %v6677_v23  ;;  %v6719_v23 = vld [vmem:[#allocation22_spill] sm:$0xff] }
 0x105   : > { %v825_v14 = vpop.f32.mrf.mxu1 }
 0x106   : > { %v5702_v57 = vadd.f32 %v4048_v0, %v831_v4  ;;  %v826_v27 = vadd.f32 %v825_v14, %v5560_v20  ;;  %v4051_v16 = vpop.f32.mrf.mxu0  ;;  %4350 = vmatmul.mubr.msk.f32.gmra.mxu0 %vm398_vm2, %v5104_v60  ;;  %v6721_v14 = vld [vmem:[#allocation30_spill] sm:$0xff] }
 0x107   : > { %v4001_v21 = vpop.f32.mrf.mxu1  ;;  %4300 = vmatmul.mubr.msk.f32.gmra.mxu1 %vm398_vm2, %v6678_v9  ;;  %4352 = vmatprep.mubr.msk.f32.mxu0 %vm398_vm2, %v5110_v49 }
 0x108   : > { %v5711_v43 = vadd.f32 %v1199_v29, %v826_v27  ;;  %v841_v10 = vadd.f32 %v4001_v21, %v5566_v61  ;;  %v1209_v17 = vpop.f32.mrf.mxu0  ;;  %4302 = vmatprep.mubr.msk.f32.mxu1 %vm398_vm2, %v6719_v23 }
 0x109   : > { %v835_v5 = vpop.f32.mrf.mxu1 }
 0x10a   : > { %v5716_v20 = vadd.f32 %v4051_v16, %v841_v10  ;;  %v836_v60 = vadd.f32 %v835_v5, %v5576_v53  ;;  %v4054_v0 = vpop.f32.mrf.mxu0  ;;  %4353 = vmatmul.mubr.msk.f32.gmra.mxu0 %vm398_vm2, %v6698_v33  ;;  %v6720_v16 = vld [vmem:[#allocation27_spill] sm:$0xff]  ;;  %v6722_v10 = vld [vmem:[#allocation32_spill] sm:$0xff] }
 0x10b   : > { %v4004_v9 = vpop.f32.mrf.mxu1  ;;  %4303 = vmatmul.mubr.msk.f32.gmra.mxu1 %vm398_vm2, %v6680_v46  ;;  %4355 = vmatprep.mubr.msk.f32.mxu0 %vm398_vm2, %v5127_v12 }
 0x10c   : > { %v5725_v49 = vadd.f32 %v1209_v17, %v836_v60  ;;  %v851_v61 = vadd.f32 %v4004_v9, %v5582_v1  ;;  %v1219_v29 = vpop.f32.mrf.mxu0  ;;  %4305 = vmatprep.mubr.msk.f32.mxu1 %vm398_vm2, %v6720_v16  ;;  %v6723_v60 = vld [vmem:[#allocation34_spill] sm:$0xff]  ;;  %v6724_v9 = vld [vmem:[#allocation36_spill] sm:$0xff] }
 0x10d   : > { %v845_v53 = vpop.f32.mrf.mxu1 }
 0x10e   : > { %v5730_v27 = vadd.f32 %v4054_v0, %v851_v61  ;;  %v846_v33 = vadd.f32 %v845_v53, %v5592_v2  ;;  %v4057_v4 = vpop.f32.mrf.mxu0  ;;  %4356 = vmatmul.mubr.msk.f32.gmra.mxu0 %vm398_vm2, %v6699_v34  ;;  %v6725_v53 = vld [vmem:[#allocation38_spill] sm:$0xff] }
 0x10f   : > { %v4007_v46 = vpop.f32.mrf.mxu1  ;;  %4306 = vmatmul.mubr.msk.f32.gmra.mxu1 %vm398_vm2, %v6721_v14  ;;  %4358 = vmatprep.mubr.msk.f32.mxu0 %vm398_vm2, %v5144_v37 }
 0x110   : > { %v5739_v12 = vadd.f32 %v1219_v29, %v846_v33  ;;  %v861_v1 = vadd.f32 %v4007_v46, %v5598_v44  ;;  %v1229_v21 = vpop.f32.mrf.mxu0  ;;  %4308 = vmatprep.mubr.msk.f32.mxu1 %vm398_vm2, %v6722_v10 }
 0x111   : > { %v855_v2 = vpop.f32.mrf.mxu1 }
 0x112   : > { %v5744_v17 = vadd.f32 %v4057_v4, %v861_v1  ;;  %v856_v34 = vadd.f32 %v855_v2, %v5608_v31  ;;  %v4060_v23 = vpop.f32.mrf.mxu0  ;;  %4359 = vmatmul.mubr.msk.f32.gmra.mxu0 %vm398_vm2, %v6700_v47  ;;  %v6726_v4 = vld [vmem:[#allocation8_spill] sm:$0xff]  ;;  %v6728_v2 = vld [vmem:[#allocation11_spill] sm:$0xff] }
 0x113   : > { %v4010_v5 = vpop.f32.mrf.mxu1  ;;  %4309 = vmatmul.mubr.msk.f32.gmra.mxu1 %vm398_vm2, %v6723_v60  ;;  %4361 = vmatprep.mubr.msk.f32.mxu0 %vm398_vm2, %v5161_v28  ;;  %v6729_v60 = vld [vmem:[#allocation13_spill] sm:$0xff] }
 0x114   : > { %v5753_v37 = vadd.f32 %v1229_v21, %v856_v34  ;;  %v871_v44 = vadd.f32 %v4010_v5, %v5614_v3  ;;  %v1239_v0 = vpop.f32.mrf.mxu0  ;;  %4311 = vmatprep.mubr.msk.f32.mxu1 %vm398_vm2, %v6724_v9  ;;  %v6727_v21 = vld [vmem:[#allocation9_spill] sm:$0xff] }
 0x115   : > { %v865_v31 = vpop.f32.mrf.mxu1 }
 0x116   : > { %v5758_v61 = vadd.f32 %v4060_v23, %v871_v44  ;;  %v866_v47 = vadd.f32 %v865_v31, %v5624_v11  ;;  %v4063_v29 = vpop.f32.mrf.mxu0  ;;  %4362 = vmatmul.mubr.msk.f32.gmra.mxu0 %vm398_vm2, %v6701_v48 }
 0x117   : > { %v4013_v16 = vpop.f32.mrf.mxu1  ;;  %4312 = vmatmul.mubr.msk.f32.gmra.mxu1 %vm398_vm2, %v6725_v53  ;;  %4364 = vmatprep.mubr.msk.f32.mxu0 %vm398_vm2, %v5178_v45  ;;  %v6732_v53 = vld [vmem:[#allocation19_spill] sm:$0xff] }
 0x118   : > { %v5767_v28 = vadd.f32 %v1239_v0, %v866_v47  ;;  %v881_v3 = vadd.f32 %v4013_v16, %v5632_v62  ;;  %v1249_v33 = vpop.f32.mrf.mxu0  ;;  %4314 = vmatprep.mubr.msk.f32.mxu1 %vm398_vm2, %v6726_v4  ;;  %v6730_v0 = vld [vmem:[#allocation15_spill] sm:$0xff] }
 0x119   : > { %v875_v11 = vpop.f32.mrf.mxu1 }
 0x11a   : > { %v5772_v46 = vadd.f32 %v4063_v29, %v881_v3  ;;  %v876_v48 = vadd.f32 %v875_v11, %v5642_v51  ;;  %v4066_v14 = vpop.f32.mrf.mxu0  ;;  %4365 = vmatmul.mubr.msk.f32.gmra.mxu0 %vm398_vm2, %v6702_v55  ;;  %v6731_v29 = vld [vmem:[#allocation17_spill] sm:$0xff] }
 0x11b   : > { %v4016_v1 = vpop.f32.mrf.mxu1  ;;  %4315 = vmatmul.mubr.msk.f32.gmra.mxu1 %vm398_vm2, %v6727_v21  ;;  %4367 = vmatprep.mubr.msk.f32.mxu0 %vm398_vm2, %v5195_v26  ;;  %v6733_v11 = vld [vmem:[#allocation21_spill] sm:$0xff] }
 0x11c   : > { %v5781_v62 = vadd.f32 %v1249_v33, %v876_v48  ;;  %v891_v45 = vadd.f32 %v4016_v1, %v5655_v50  ;;  %v1259_v10 = vpop.f32.mrf.mxu0  ;;  %4317 = vmatprep.mubr.msk.f32.mxu1 %vm398_vm2, %v6728_v2 }
 0x11d   : > { %v885_v51 = vpop.f32.mrf.mxu1 }
 0x11e   : > { %v5786_v34 = vadd.f32 %v4066_v14, %v891_v45  ;;  %v886_v55 = vadd.f32 %v885_v51, %v5668_v52  ;;  %v4069_v23 = vpop.f32.mrf.mxu0  ;;  %4368 = vmatmul.mubr.msk.f32.gmra.mxu0 %vm398_vm2, %v6703_v19  ;;  %v6734_v14 = vld [vmem:[#allocation23_spill] sm:$0xff]  ;;  %v6736_v51 = vld [vmem:[#allocation28_spill] sm:$0xff] }
 0x11f   : > { %v4019_v5 = vpop.f32.mrf.mxu1  ;;  %4318 = vmatmul.mubr.msk.f32.gmra.mxu1 %vm398_vm2, %v6729_v60  ;;  %4370 = vmatprep.mubr.msk.f32.mxu0 %vm398_vm2, %v5212_v42  ;;  %v6737_v60 = vld [vmem:[#allocation31_spill] sm:$0xff] }
 0x120   : > { %v5795_v26 = vadd.f32 %v1259_v10, %v886_v55  ;;  %v901_v50 = vadd.f32 %v4019_v5, %v5677_v41  ;;  %v1269_v44 = vpop.f32.mrf.mxu0  ;;  %4320 = vmatprep.mubr.msk.f32.mxu1 %vm398_vm2, %v6730_v0  ;;  %v6735_v10 = vld [vmem:[#allocation26_spill] sm:$0xff] }
 0x121   : > { %v895_v52 = vpop.f32.mrf.mxu1 }
 0x122   : > { %v5800_v9 = vadd.f32 %v4069_v23, %v901_v50  ;;  %v896_v19 = vadd.f32 %v895_v52, %v5687_v15  ;;  %v4072_v31 = vpop.f32.mrf.mxu0  ;;  %4371 = vmatmul.mubr.msk.f32.gmra.mxu0 %vm398_vm2, %v6704_v25 }
 0x123   : > { %v4022_v47 = vpop.f32.mrf.mxu1  ;;  %4321 = vmatmul.mubr.msk.f32.gmra.mxu1 %vm398_vm2, %v6731_v29  ;;  %4373 = vmatprep.mubr.msk.f32.mxu0 %vm398_vm2, %v6705_v30  ;;  %v6740_v29 = vld [vmem:[#allocation12_spill] sm:$0xff] }
 0x124   : > { %v5809_v42 = vadd.f32 %v1269_v44, %v896_v19  ;;  %v911_v41 = vadd.f32 %v4022_v47, %v5554_v8  ;;  %v1279_v16 = vpop.f32.mrf.mxu0  ;;  %4323 = vmatprep.mubr.msk.f32.mxu1 %vm398_vm2, %v6732_v53  ;;  %v6738_v44 = vld [vmem:[#allocation33_spill] sm:$0xff]  ;;  %v2466_v53 = vrot.slane %v5647_v36, 1 }
 0x125   : > { %v905_v15 = vpop.f32.mrf.mxu1 }
 0x126   : > { %v5814_v3 = vadd.f32 %v4072_v31, %v911_v41  ;;  %v906_v25 = vadd.f32 %v905_v15, %v5564_v35  ;;  %v4075_v33 = vpop.f32.mrf.mxu0  ;;  %4374 = vmatmul.mubr.msk.f32.gmra.mxu0 %vm398_vm2, %v6706_v24  ;;  %v2737_v31 = vrot.slane %v5666_v32, 2  ;;  %v2467_v15 = vrot.slane %v5666_v32, 1  ;;  %v6746_v32 = vld [vmem:[#allocation16_spill] sm:$0xff] }
 0x127   : > { %v4025_v4 = vpop.f32.mrf.mxu1  ;;  %4324 = vmatmul.mubr.msk.f32.gmra.mxu1 %vm398_vm2, %v6733_v11  ;;  %4376 = vmatprep.mubr.msk.f32.mxu0 %vm398_vm2, %v6707_v40 }
 0x128   : > { %v5823_v8 = vadd.f32 %v1279_v16, %v906_v25  ;;  %v921_v30 = vadd.f32 %v4025_v4, %v5570_v39  ;;  %v1289_v48 = vpop.f32.mrf.mxu0  ;;  %4326 = vmatprep.mubr.msk.f32.mxu1 %vm398_vm2, %v6734_v14  ;;  %v6741_v16 = vld [vmem:[#allocation37_spill] sm:$0xff]  ;;  %v6744_v14 = vld [vmem:[#allocation39_spill] sm:$0xff] }
 0x129   : > { %v915_v35 = vpop.f32.mrf.mxu1 }
 0x12a   : > { %v5828_v1 = vadd.f32 %v4075_v33, %v921_v30  ;;  %v916_v24 = vadd.f32 %v915_v35, %v5580_v59  ;;  %v4078_v21 = vpop.f32.mrf.mxu0  ;;  %4377 = vmatmul.mubr.msk.f32.gmra.mxu0 %vm398_vm2, %v6708_v22  ;;  %v6743_v30 = vld [vmem:[#allocation24_spill] sm:$0xff] }
 0x12b   : > { %v4028_v45 = vpop.f32.mrf.mxu1  ;;  %4327 = vmatmul.mubr.msk.f32.gmra.mxu1 %vm398_vm2, %v6735_v10  ;;  %4379 = vmatprep.mubr.msk.f32.mxu0 %vm398_vm2, %v5263_v38  ;;  %v6745_v35 = vld [vmem:[#allocation20_spill] sm:$0xff]  ;;  %v6747_v10 = vld [vmem:[#allocation29_spill] sm:$0xff] }
 0x12c   : > { %v5837_v39 = vadd.f32 %v1289_v48, %v916_v24  ;;  %v931_v40 = vadd.f32 %v4028_v45, %v5586_v54  ;;  %v1299_v2 = vpop.f32.mrf.mxu0  ;;  %4329 = vmatprep.mubr.msk.f32.mxu1 %vm398_vm2, %v6736_v51 }
 0x12d   : > { %v925_v59 = vpop.f32.mrf.mxu1 }
 0x12e   : > { %v5842_v55 = vadd.f32 %v4078_v21, %v931_v40  ;;  %v926_v22 = vadd.f32 %v925_v59, %v5596_v7  ;;  %v4081_v23 = vpop.f32.mrf.mxu0  ;;  %4380 = vmatmul.mubr.msk.f32.gmra.mxu0 %vm398_vm2, %v5274_v58  ;;  %v2468_v59 = vsel %vm316_vm1, %v2466_v53, %v2467_v15 }
 0x12f   : > { %v4031_v5 = vpop.f32.mrf.mxu1  ;;  %4330 = vmatmul.mubr.msk.f32.gmra.mxu1 %vm398_vm2, %v6737_v60  ;;  %4382 = vmatprep.mubr.msk.f32.mxu0 %vm398_vm2, %v5280_v56  ;;  %v6739_v56 = vld [vmem:[#allocation35_spill] sm:$0xff] }
 0x130   : > { %v5851_v38 = vadd.f32 %v1299_v2, %v926_v22  ;;  %v941_v54 = vadd.f32 %v4031_v5, %v5602_v6  ;;  %v1309_v50 = vpop.f32.mrf.mxu0  ;;  %4332 = vmatprep.mubr.msk.f32.mxu1 %vm398_vm2, %v6738_v44  ;;  %v2736_v6 = vrot.slane %v5647_v36, 2  ;;  %v6750_v44 = vld [vmem:[#allocation10_spill] sm:$0xff] }
 0x131   : > { %v935_v7 = vpop.f32.mrf.mxu1 }
 0x132   : > { %v5856_v0 = vadd.f32 %v4081_v23, %v941_v54  ;;  %v936_v58 = vadd.f32 %v935_v7, %v5612_v18  ;;  %v4084_v52 = vpop.f32.mrf.mxu0  ;;  %4383 = vmatmul.mubr.msk.f32.gmra.mxu0 %vm398_vm2, %v5291_v63  ;;  %v266_v63 = vld [vmem:[%s4666_s9 + $0x1a8] sm:$0x3]  ;;  %v2738_v40 = vsel %vm984_vm3, %v2736_v6, %v2737_v31  ;;  %v6748_v23 = vld [vmem:[#allocation18_spill] sm:$0xff]  ;;  %s3199_s9 = sshll.u32 %s6158_s7, 4  ;;  %s6396_s9 = int_to_ptr.vmem [resolvable:$true] %s3199_s9 }
 0x133   : > { %v4034_v19 = vpop.f32.mrf.mxu1  ;;  %4333 = vmatmul.mubr.msk.f32.gmra.mxu1 %vm398_vm2, %v6739_v56  ;;  %4385 = vmatprep.mubr.msk.f32.mxu0 %vm398_vm2, %v5297_v13  ;;  %v6742_v13 = vld [vmem:[#allocation14_spill] sm:$0xff]  ;;  %v2739_v24 = vrot.slane %v266_v63, 2  ;;  %v2469_v2 = vrot.slane %v266_v63, 1  ;;  %v6749_v54 = vld [vmem:[#allocation40_spill] sm:$0xff]  ;;  %s4459_s21 = scalar_lea.vmem %s6396_s9, 4096  ;;  %p4466_p1 = scmp.lt.s32.totalorder %s6396_s9, %s4464_s26 }
 0x134   : > { %v5867_v47 = vadd.f32 %v1309_v50, %v936_v58  ;;  %v951_v41 = vadd.f32 %v4034_v19, %v6740_v29  ;;  %v1319_v18 = vpop.f32.mrf.mxu0  ;;  %4335 = vmatprep.mubr.msk.f32.mxu1 %vm398_vm2, %v6741_v16  ;;  %p4460_p12 = scmp.ne.s32.totalorder %s6396_s9, %s4459_s21  ;;  %p4467_p2 = scmp.lt.s32.totalorder %s4465_s27, %s4459_s21 }
 0x135   : > { %v945_v25 = vpop.f32.mrf.mxu1  ;;  %v2740_v7 = vsel %vm984_vm3, %v2737_v31, %v2739_v24  ;;  %v2470_v6 = vsel %vm316_vm1, %v2467_v15, %v2469_v2  ;;  %v6754_v15 = vld [vmem:[#allocation43_spill] sm:$0xff] }
 0x136   : > { %v5875_v33 = vadd.f32 %v4084_v52, %v951_v41  ;;  %v946_v4 = vadd.f32 %v945_v25, %v6742_v13  ;;  %v4087_v11 = vpop.f32.mrf.mxu0  ;;  %4386 = vmatmul.mubr.msk.f32.gmra.mxu0 %vm398_vm2, %v6743_v30  ;;  %v6751_v52 = vld [vmem:[#allocation25_spill] sm:$0xff]  ;;  %v6753_v25 = vld [vmem:[#allocation42_spill] sm:$0xff]  ;;  %p4461_p13 = pnand %p4460_p12, %p4631_p4  ;;  %p4468_p3 = por %p4467_p2, %p4466_p1 }
 0x137   : > { %v4037_v48 = vpop.f32.mrf.mxu1  ;;  %4336 = vmatmul.mubr.msk.f32.gmra.mxu1 %vm398_vm2, %v6744_v14  ;;  %4388 = vmatprep.mubr.msk.f32.mxu0 %vm398_vm2, %v6745_v35 }
 0x138   : > { %v5884_v36 = vadd.f32 %v1319_v18, %v946_v4  ;;  %v961_v21 = vadd.f32 %v4037_v48, %v6746_v32  ;;  %v1329_v45 = vpop.f32.mrf.mxu0  ;;  %4338 = vmatprep.mubr.msk.f32.mxu1 %vm398_vm2, %v6747_v10  ;;  %v6752_v18 = vld [vmem:[#allocation41_spill] sm:$0xff]  ;;  %p4462_p0 = pneg %p4461_p13 }
 0x139   : > { %v955_v51 = vpop.f32.mrf.mxu1 }
 0x13a   : > { %v5891_v22 = vadd.f32 %v4087_v11, %v961_v21  ;;  %v956_v5 = vadd.f32 %v955_v51, %v6748_v23  ;;  %v4090_v60 = vpop.f32.mrf.mxu0  ;;  %4389 = vmatmul.mubr.msk.f32.gmra.mxu0 %vm398_vm2, %v6749_v54  ;;  %p4469_p5 = pnand %p4468_p3, %p4462_p0 }
 0x13b   : > { %v4040_v50 = vpop.f32.mrf.mxu1  ;;  %4339 = vmatmul.mubr.msk.f32.gmra.mxu1 %vm398_vm2, %v6750_v44  ;;  %4391 = vmatprep.mubr.msk.f32.mxu0 %vm398_vm2, %v2738_v40 }
 0x13c   : > { %v5900_v58 = vadd.f32 %v1329_v45, %v956_v5  ;;  %v971_v19 = vadd.f32 %v4040_v50, %v6751_v52  ;;  %v1339_v56 = vpop.f32.mrf.mxu0  ;;  %4341 = vmatprep.mubr.msk.f32.mxu1 %vm398_vm2, %v2468_v59 }
 0x13d   : > { %v965_v29 = vpop.f32.mrf.mxu1 }
 0x13e   : > { %v5905_v41 = vadd.f32 %v4090_v60, %v971_v19  ;;  %v966_v16 = vadd.f32 %v965_v29, %v6752_v18  ;;  %v4093_v63 = vpop.f32.mrf.mxu0  ;;  %4392 = vmatmul.mubr.msk.f32.gmra.mxu0 %vm398_vm2, %v2740_v7 }
 0x13f   : > { %v4043_v53 = vpop.f32.mrf.mxu1  ;;  %4342 = vmatmul.mubr.msk.f32.gmra.mxu1 %vm398_vm2, %v2470_v6 }
 0x140   : > { %v5910_v31 = vadd.f32 %v1339_v56, %v966_v16  ;;  %v981_v13 = vadd.f32 %v4043_v53, %v6753_v25  ;;  %v1349_v4 = vpop.f32.mrf.mxu0 }
 0x141   : > { %v975_v11 = vpop.f32.mrf.mxu1 }
 0x142   : > { %v5913_v30 = vadd.f32 %v4093_v63, %v981_v13  ;;  %v976_v48 = vadd.f32 %v975_v11, %v6754_v15  ;;  %v4148_v14 = vpop.f32.mrf.mxu0 }
 0x143   : > { %v4098_v35 = vpop.f32.mrf.mxu1 }
 0x144   : > { %v5916_v24 = vadd.f32 %v1349_v4, %v976_v48  ;;  %v1626_v32 = vadd.f32 %v4098_v35, %v5702_v57  ;;  %v1737_v21 = vpop.f32.mrf.mxu0 }
 0x145   : > { %v1466_v45 = vpop.f32.mrf.mxu1 }
 0x146   : > { %v5919_v10 = vadd.f32 %v4148_v14, %v1626_v32  ;;  %v1625_v40 = vadd.f32 %v1466_v45, %v5711_v43  ;;  %v4151_v2 = vpop.f32.mrf.mxu0 }
 0x147   : > { %v4101_v51 = vpop.f32.mrf.mxu1 }
 0x148   : > { %v5922_v59 = vadd.f32 %v1737_v21, %v1625_v40  ;;  %v1628_v23 = vadd.f32 %v4101_v51, %v5716_v20  ;;  %v1747_v5 = vpop.f32.mrf.mxu0 }
 0x149   : > { %v1476_v60 = vpop.f32.mrf.mxu1 }
 0x14a   : > { %v5925_v54 = vadd.f32 %v4151_v2, %v1628_v23  ;;  %v1627_v50 = vadd.f32 %v1476_v60, %v5725_v49  ;;  %v4154_v44 = vpop.f32.mrf.mxu0 }
 0x14b   : > { %v4104_v57 = vpop.f32.mrf.mxu1 }
 0x14c   : > { %v5928_v7 = vadd.f32 %v1747_v5, %v1627_v50  ;;  %v1630_v52 = vadd.f32 %v4104_v57, %v5730_v27  ;;  %v1757_v19 = vpop.f32.mrf.mxu0 }
 0x14d   : > { %v1486_v43 = vpop.f32.mrf.mxu1 }
 0x14e   : > { %v5931_v56 = vadd.f32 %v4154_v44, %v1630_v52  ;;  %v1629_v6 = vadd.f32 %v1486_v43, %v5739_v12  ;;  %v4157_v29 = vpop.f32.mrf.mxu0 }
 0x14f   : > { %v4107_v20 = vpop.f32.mrf.mxu1 }
 0x150   : > { %v5934_v18 = vadd.f32 %v1757_v19, %v1629_v6  ;;  %v1632_v16 = vadd.f32 %v4107_v20, %v5744_v17  ;;  %v1767_v63 = vpop.f32.mrf.mxu0 }
 0x151   : > { %v1496_v49 = vpop.f32.mrf.mxu1 }
 0x152   : > { %v5937_v53 = vadd.f32 %v4157_v29, %v1632_v16  ;;  %v1631_v25 = vadd.f32 %v1496_v49, %v5753_v37  ;;  %v4160_v13 = vpop.f32.mrf.mxu0 }
 0x153   : > { %v4110_v27 = vpop.f32.mrf.mxu1 }
 0x154   : > { %v5940_v4 = vadd.f32 %v1767_v63, %v1631_v25  ;;  %v1634_v11 = vadd.f32 %v4110_v27, %v5758_v61  ;;  %v1777_v15 = vpop.f32.mrf.mxu0 }
 0x155   : > { %v1506_v12 = vpop.f32.mrf.mxu1 }
 0x156   : > { %v5943_v48 = vadd.f32 %v4160_v13, %v1634_v11  ;;  %v1633_v14 = vadd.f32 %v1506_v12, %v5767_v28  ;;  %v4163_v35 = vpop.f32.mrf.mxu0 }
 0x157   : > { %v4113_v17 = vpop.f32.mrf.mxu1 }
 0x158   : > { %v5946_v32 = vadd.f32 %v1777_v15, %v1633_v14  ;;  %v1636_v21 = vadd.f32 %v4113_v17, %v5772_v46  ;;  %v1787_v45 = vpop.f32.mrf.mxu0 }
 0x159   : > { %v1516_v37 = vpop.f32.mrf.mxu1 }
 0x15a   : > { %v5949_v40 = vadd.f32 %v4163_v35, %v1636_v21  ;;  %v1635_v2 = vadd.f32 %v1516_v37, %v5781_v62  ;;  %v4166_v51 = vpop.f32.mrf.mxu0 }
 0x15b   : > { %v4116_v61 = vpop.f32.mrf.mxu1 }
 0x15c   : > { %v5952_v23 = vadd.f32 %v1787_v45, %v1635_v2  ;;  %v1638_v5 = vadd.f32 %v4116_v61, %v5786_v34  ;;  %v1797_v60 = vpop.f32.mrf.mxu0 }
 0x15d   : > { %v1526_v28 = vpop.f32.mrf.mxu1 }
 0x15e   : > { %v5955_v50 = vadd.f32 %v4166_v51, %v1638_v5  ;;  %v1637_v44 = vadd.f32 %v1526_v28, %v5795_v26  ;;  %v4169_v57 = vpop.f32.mrf.mxu0 }
 0x15f   : > { %v4119_v46 = vpop.f32.mrf.mxu1 }
 0x160   : > { %v5958_v52 = vadd.f32 %v1797_v60, %v1637_v44  ;;  %v1640_v19 = vadd.f32 %v4119_v46, %v5800_v9  ;;  %v1807_v43 = vpop.f32.mrf.mxu0 }
 0x161   : > { %v1536_v62 = vpop.f32.mrf.mxu1 }
 0x162   : > { %v5961_v6 = vadd.f32 %v4169_v57, %v1640_v19  ;;  %v1639_v29 = vadd.f32 %v1536_v62, %v5809_v42  ;;  %v4172_v20 = vpop.f32.mrf.mxu0 }
 0x163   : > { %v4122_v34 = vpop.f32.mrf.mxu1 }
 0x164   : > { %v5964_v16 = vadd.f32 %v1807_v43, %v1639_v29  ;;  %v1642_v63 = vadd.f32 %v4122_v34, %v5814_v3  ;;  %v1817_v49 = vpop.f32.mrf.mxu0 }
 0x165   : > { %v1546_v26 = vpop.f32.mrf.mxu1 }
 0x166   : > { %v5967_v25 = vadd.f32 %v4172_v20, %v1642_v63  ;;  %v1641_v13 = vadd.f32 %v1546_v26, %v5823_v8  ;;  %v4175_v27 = vpop.f32.mrf.mxu0 }
 0x167   : > { %v4125_v9 = vpop.f32.mrf.mxu1 }
 0x168   : > { %v5970_v11 = vadd.f32 %v1817_v49, %v1641_v13  ;;  %v1644_v15 = vadd.f32 %v4125_v9, %v5828_v1  ;;  %v1827_v12 = vpop.f32.mrf.mxu0 }
 0x169   : > { %v1556_v42 = vpop.f32.mrf.mxu1 }
 0x16a   : > { %v5973_v14 = vadd.f32 %v4175_v27, %v1644_v15  ;;  %v1643_v35 = vadd.f32 %v1556_v42, %v5837_v39  ;;  %v4178_v17 = vpop.f32.mrf.mxu0 }
 0x16b   : > { %v4128_v3 = vpop.f32.mrf.mxu1 }
 0x16c   : > { %6755 = vst [vmem:[#allocation44_spill] sm:$0xff] %v5973_v14  ;;  %v5976_v21 = vadd.f32 %v1827_v12, %v1643_v35  ;;  %v1646_v45 = vadd.f32 %v4128_v3, %v5842_v55  ;;  %v1837_v37 = vpop.f32.mrf.mxu0 }
 0x16d   : > { %v1566_v8 = vpop.f32.mrf.mxu1 }
 0x16e   : > { %6756 = vst [vmem:[#allocation45_spill] sm:$0xff] %v5976_v21  ;;  %v5979_v2 = vadd.f32 %v4178_v17, %v1646_v45  ;;  %v1645_v51 = vadd.f32 %v1566_v8, %v5851_v38  ;;  %v4181_v61 = vpop.f32.mrf.mxu0 }
 0x16f   : > { %v4131_v1 = vpop.f32.mrf.mxu1 }
 0x170   : > { %6757 = vst [vmem:[#allocation46_spill] sm:$0xff] %v5979_v2  ;;  %v5982_v5 = vadd.f32 %v1837_v37, %v1645_v51  ;;  %v1648_v60 = vadd.f32 %v4131_v1, %v5856_v0  ;;  %v1847_v28 = vpop.f32.mrf.mxu0 }
 0x171   : > { %v1576_v39 = vpop.f32.mrf.mxu1 }
 0x172   : > { %6758 = vst [vmem:[#allocation47_spill] sm:$0xff] %v5982_v5  ;;  %v5985_v44 = vadd.f32 %v4181_v61, %v1648_v60  ;;  %v1647_v57 = vadd.f32 %v1576_v39, %v5867_v47  ;;  %v4184_v46 = vpop.f32.mrf.mxu0 }
 0x173   : > { %v4134_v55 = vpop.f32.mrf.mxu1 }
 0x174   : > { %6759 = vst [vmem:[#allocation48_spill] sm:$0xff] %v5985_v44  ;;  %v5988_v19 = vadd.f32 %v1847_v28, %v1647_v57  ;;  %v1650_v43 = vadd.f32 %v4134_v55, %v5875_v33  ;;  %v1857_v62 = vpop.f32.mrf.mxu0 }
 0x175   : > { %v1586_v38 = vpop.f32.mrf.mxu1 }
 0x176   : > { %6760 = vst [vmem:[#allocation49_spill] sm:$0xff] %v5988_v19  ;;  %v5991_v29 = vadd.f32 %v4184_v46, %v1650_v43  ;;  %v1649_v20 = vadd.f32 %v1586_v38, %v5884_v36  ;;  %v4187_v34 = vpop.f32.mrf.mxu0 }
 0x177   : > { %v4137_v0 = vpop.f32.mrf.mxu1 }
 0x178   : > { %6761 = vst [vmem:[#allocation50_spill] sm:$0xff] %v5991_v29  ;;  %v5994_v63 = vadd.f32 %v1857_v62, %v1649_v20  ;;  %v1652_v49 = vadd.f32 %v4137_v0, %v5891_v22  ;;  %v1867_v26 = vpop.f32.mrf.mxu0 }
 0x179   : > { %v1596_v47 = vpop.f32.mrf.mxu1 }
 0x17a   : > { %6762 = vst [vmem:[#allocation22_spill] sm:$0xff] %v5994_v63  ;;  %v5997_v13 = vadd.f32 %v4187_v34, %v1652_v49  ;;  %v1651_v27 = vadd.f32 %v1596_v47, %v5900_v58  ;;  %v4190_v9 = vpop.f32.mrf.mxu0 }
 0x17b   : > { %v4140_v33 = vpop.f32.mrf.mxu1 }
 0x17c   : > { %6763 = vst [vmem:[#allocation27_spill] sm:$0xff] %v5997_v13  ;;  %v6000_v15 = vadd.f32 %v1867_v26, %v1651_v27  ;;  %v1654_v12 = vadd.f32 %v4140_v33, %v5905_v41  ;;  %v1877_v42 = vpop.f32.mrf.mxu0 }
 0x17d   : > { %v1606_v36 = vpop.f32.mrf.mxu1 }
 0x17e   : > { %6764 = vst [vmem:[#allocation30_spill] sm:$0xff] %v6000_v15  ;;  %v6003_v35 = vadd.f32 %v4190_v9, %v1654_v12  ;;  %v1653_v17 = vadd.f32 %v1606_v36, %v5910_v31  ;;  %v4193_v3 = vpop.f32.mrf.mxu0 }
 0x17f   : > { %v4143_v22 = vpop.f32.mrf.mxu1 }
 0x180   : > { %6765 = vst [vmem:[#allocation32_spill] sm:$0xff] %v6003_v35  ;;  %v6006_v45 = vadd.f32 %v1877_v42, %v1653_v17  ;;  %v1656_v37 = vadd.f32 %v4143_v22, %v5913_v30  ;;  %v1887_v8 = vpop.f32.mrf.mxu0 }
 0x181   : > { %v1616_v58 = vpop.f32.mrf.mxu1 }
 0x182   : > { %6766 = vst [vmem:[#allocation34_spill] sm:$0xff] %v6006_v45  ;;  %v6009_v51 = vadd.f32 %v4193_v3, %v1656_v37  ;;  %v1655_v61 = vadd.f32 %v1616_v58, %v5916_v24  ;;  %v6012_v1 = vpop.f32.mrf.mxu0 }
 0x183   : > { %v4198_v41 = vpop.f32.mrf.mxu1 }
 0x184   : > { %6767 = vst [vmem:[#allocation36_spill] sm:$0xff] %v6009_v51  ;;  %v6014_v60 = vadd.f32 %v1887_v8, %v1655_v61  ;;  %v6016_v28 = vpop.f32.mrf.mxu0 }
 0x185   : > { %v2007_v31 = vpop.f32.mrf.mxu1 }
 0x186   : > { %6768 = vst [vmem:[#allocation38_spill] sm:$0xff] %v6014_v60  ;;  %v6018_v39 = vpop.f32.mrf.mxu0 }
 0x187   : > { %v6020_v57 = vpop.f32.mrf.mxu1 }
 0x188   : > { %v6022_v46 = vpop.f32.mrf.mxu0 }
 0x189   : > { %v6024_v30 = vpop.f32.mrf.mxu1 }
 0x18a   : > { %v6026_v55 = vpop.f32.mrf.mxu0 }
 0x18b   : > { %v6028_v43 = vpop.f32.mrf.mxu1 }
 0x18c   : > { %v6030_v24 = vpop.f32.mrf.mxu0 }
 0x18d   : > { %v6032_v62 = vpop.f32.mrf.mxu1 }
 0x18e   : > { %v6034_v38 = vpop.f32.mrf.mxu0 }
 0x18f   : > { %v6036_v20 = vpop.f32.mrf.mxu1 }
 0x190   : > { %v6038_v34 = vpop.f32.mrf.mxu0 }
 0x191   : > { %v6040_v0 = vpop.f32.mrf.mxu1 }
 0x192   : > { %v6042_v49 = vpop.f32.mrf.mxu0 }
 0x193   : > { %v6044_v26 = vpop.f32.mrf.mxu1 }
 0x194   : > { %v6046_v47 = vpop.f32.mrf.mxu0 }
 0x195   : > { %v6048_v27 = vpop.f32.mrf.mxu1 }
 0x196   : > { %v6050_v9 = vpop.f32.mrf.mxu0 }
 0x197   : > { %v6052_v33 = vpop.f32.mrf.mxu1 }
 0x198   : > { %v6054_v12 = vpop.f32.mrf.mxu0 }
 0x199   : > { %v6056_v42 = vpop.f32.mrf.mxu1 }
 0x19a   : > { %v6058_v36 = vpop.f32.mrf.mxu0 }
 0x19b   : > { %v6060_v17 = vpop.f32.mrf.mxu1 }
 0x19c   : > { %v6062_v3 = vpop.f32.mrf.mxu0 }
 0x19d   : > { %v6064_v22 = vpop.f32.mrf.mxu1 }
 0x19e   : > { %v6066_v37 = vpop.f32.mrf.mxu0 }
 0x19f   : > { %v6068_v8 = vpop.f32.mrf.mxu1 }
 0x1a0   : > { %v6070_v58 = vpop.f32.mrf.mxu0 }
 0x1a1   : > { %v6072_v61 = vpop.f32.mrf.mxu1 }
 0x1a2   : > { %v6074_v60 = vpop.f32.mrf.mxu0 }
 0x1a3   : > { %v6076_v51 = vpop.f32.mrf.mxu1 }
 0x1a4   : > { %v6078_v45 = vpop.f32.mrf.mxu0 }
 0x1a5   : > { %6769 = vst [vmem:[#allocation8_spill] sm:$0xff] %v6078_v45  ;;  %v6080_v35 = vpop.f32.mrf.mxu1 }
 0x1a6   : > { %v6082_v15 = vpop.f32.mrf.mxu0 }
 0x1a7   : > { %6770 = vst [vmem:[#allocation9_spill] sm:$0xff] %v6082_v15  ;;  %v6084_v13 = vpop.f32.mrf.mxu1 }
 0x1a8   : > { %6771 = vst [vmem:[#allocation11_spill] sm:$0xff] %v6084_v13  ;;  %v6086_v63 = vpop.f32.mrf.mxu0 }
 0x1a9   : > { %6772 = vst [vmem:[#allocation13_spill] sm:$0xff] %v6086_v63  ;;  %v6088_v29 = vpop.f32.mrf.mxu1 }
 0x1aa   : > { %6773 = vst [vmem:[#allocation15_spill] sm:$0xff] %v6088_v29  ;;  %v6090_v19 = vpop.f32.mrf.mxu0 }
 0x1ab   : > { %6774 = vst [vmem:[#allocation17_spill] sm:$0xff] %v6090_v19  ;;  %v6092_v44 = vpop.f32.mrf.mxu1 }
 0x1ac   : > { %6775 = vst [vmem:[#allocation19_spill] sm:$0xff] %v6092_v44  ;;  %v6094_v5 = vpop.f32.mrf.mxu0 }
 0x1ad   : > { %6776 = vst [vmem:[#allocation21_spill] sm:$0xff] %v6094_v5  ;;  %v6096_v2 = vpop.f32.mrf.mxu1 }
 0x1ae   : > { %6777 = vst [vmem:[#allocation23_spill] sm:$0xff] %v6096_v2  ;;  %v6098_v21 = vpop.f32.mrf.mxu0 }
 0x1af   : > { %6778 = vst [vmem:[#allocation26_spill] sm:$0xff] %v6098_v21  ;;  %v6100_v45 = vpop.f32.mrf.mxu1 }
 0x1b0   : > { %6779 = vst [vmem:[#allocation28_spill] sm:$0xff] %v6100_v45  ;;  %v6102_v14 = vpop.f32.mrf.mxu0 }
 0x1b1   : > { %6780 = vst [vmem:[#allocation31_spill] sm:$0xff] %v6102_v14  ;;  %v6104_v15 = vpop.f32.mrf.mxu1 }
 0x1b2   : > { %6781 = vst [vmem:[#allocation33_spill] sm:$0xff] %v6104_v15  ;;  %v6106_v63 = vpop.f32.mrf.mxu0 }
 0x1b3   : > { %6782 = vst [vmem:[#allocation35_spill] sm:$0xff] %v6106_v63  ;;  %v6108_v29 = vpop.f32.mrf.mxu1 }
 0x1b4   : > { %6783 = vst [vmem:[#allocation12_spill] sm:$0xff] %v6108_v29  ;;  %v6110_v19 = vpop.f32.mrf.mxu0 }
 0x1b5   : > { %6784 = vst [vmem:[#allocation37_spill] sm:$0xff] %v6110_v19  ;;  %v6112_v44 = vpop.f32.mrf.mxu1  ;;  %v2167_v19 = vadd.f32 %v4198_v41, %v5919_v10 }
 0x1b6   : > { %6785 = vst [vmem:[#allocation14_spill] sm:$0xff] %v6112_v44  ;;  %v6114_v5 = vpop.f32.mrf.mxu0 }
 0x1b7   : > { %6786 = vst [vmem:[#allocation24_spill] sm:$0xff] %v6114_v5  ;;  %v6116_v2 = vpop.f32.mrf.mxu1 }
 0x1b8   : > { %v6118_v21 = vpop.f32.mrf.mxu0 }
 0x1b9   : > { %6787 = vst [vmem:[#allocation39_spill] sm:$0xff] %v6118_v21  ;;  %v6120_v45 = vpop.f32.mrf.mxu1  ;;  %v2166_v21 = vadd.f32 %v2007_v31, %v5922_v59 }
 0x1ba   : > { %6788 = vst [vmem:[#allocation20_spill] sm:$0xff] %v6120_v45  ;;  %v6122_v14 = vpop.f32.mrf.mxu0 }
 0x1bb   : > { %6789 = vst [vmem:[#allocation16_spill] sm:$0xff] %v6122_v14  ;;  %v6124_v15 = vpop.f32.mrf.mxu1 }
 0x1bc   : > { %6790 = vst [vmem:[#allocation29_spill] sm:$0xff] %v6124_v15  ;;  %v6126_v13 = vpop.f32.mrf.mxu0  ;;  %v2434_v15 = vadd.f32 %v6012_v1, %v2167_v19 }
 0x1bd   : > { %6791 = vst [vmem:[#allocation18_spill] sm:$0xff] %v6126_v13  ;;  %v6128_v63 = vpop.f32.mrf.mxu1  ;;  %v2169_v13 = vadd.f32 %v6020_v57, %v5925_v54  ;;  %v2170_v57 = vadd.f32 %v6032_v62, %v5934_v18  ;;  %v2173_v18 = vadd.f32 %v6036_v20, %v5937_v53 }
 0x1be   : > { %6792 = vst [vmem:[#allocation40_spill] sm:$0xff] %v6128_v63  ;;  %v6131_v29 = vpop.f32.mrf.mxu0 }
 0x1bf   : > { %6793 = vst [vmem:[#allocation10_spill] sm:$0xff] %v6131_v29  ;;  %v6133_v44 = vpop.f32.mrf.mxu1  ;;  %v2433_v29 = vadd.f32 %v6016_v28, %v2166_v21  ;;  %v2436_v31 = vadd.f32 %v6018_v39, %v2169_v13  ;;  %v2437_v39 = vadd.f32 %v6030_v24, %v2170_v57  ;;  %v2440_v24 = vadd.f32 %v6034_v38, %v2173_v18 }
 0x1c0   : > { %6794 = vst [vmem:[#allocation25_spill] sm:$0xff] %v6133_v44  ;;  %v6139_v5 = vpop.f32.mrf.mxu0  ;;  %v2168_v44 = vadd.f32 %v6024_v30, %v5928_v7  ;;  %v2177_v57 = vadd.f32 %v6052_v33, %v5949_v40  ;;  %v2179_v18 = vadd.f32 %v6060_v17, %v5955_v50 }
 0x1c1   : > { %6795 = vst [vmem:[#allocation41_spill] sm:$0xff] %v6139_v5  ;;  %v6141_v14 = vpop.f32.mrf.mxu1  ;;  %v2171_v5 = vadd.f32 %v6028_v43, %v5931_v56 }
 0x1c2   : > { %6796 = vst [vmem:[#allocation42_spill] sm:$0xff] %v6141_v14  ;;  %v4348_v10 = vpop.f32.mrf.mxu0  ;;  %v2435_v21 = vadd.f32 %v6022_v46, %v2168_v44 }
 0x1c3   : > { %v4298_v41 = vpop.f32.mrf.mxu1 }
 0x1c4   : > { %v2705_v63 = vadd.f32 %v4298_v41, %v2434_v15  ;;  %v2815_v45 = vpop.f32.mrf.mxu0 }
 0x1c5   : > { %v2545_v59 = vpop.f32.mrf.mxu1 }
 0x1c6   : > { %v6153_v19 = vadd.f32 %v4348_v10, %v2705_v63  ;;  %v2704_v1 = vadd.f32 %v2545_v59, %v2433_v29  ;;  %v4351_v54 = vpop.f32.mrf.mxu0  ;;  %v2438_v29 = vadd.f32 %v6026_v55, %v2171_v5  ;;  %v2175_v55 = vadd.f32 %v6044_v26, %v5943_v48 }
 0x1c7   : > { %v4301_v14 = vpop.f32.mrf.mxu1  ;;  %v2174_v10 = vadd.f32 %v6048_v27, %v5946_v32 }
 0x1c8   : > { %3007 = vst [vmem:[%s6158_s7 + $0x8] sm:$0xff] %v6153_v19  ;;  %v6162_v7 = vadd.f32 %v2815_v45, %v2704_v1  ;;  %v2707_v56 = vadd.f32 %v4301_v14, %v2436_v31  ;;  %v2825_v63 = vpop.f32.mrf.mxu0  ;;  %v2172_v14 = vadd.f32 %v6040_v0, %v5940_v4  ;;  %v2442_v1 = vadd.f32 %v6042_v49, %v2175_v55 }
 0x1c9   : > { %v2555_v13 = vpop.f32.mrf.mxu1 }
 0x1ca   : > { %3006 = vst [vmem:[%s6158_s7] sm:$0xff] %v6162_v7  ;;  %v6169_v44 = vadd.f32 %v4351_v54, %v2707_v56  ;;  %v2706_v15 = vadd.f32 %v2555_v13, %v2435_v21  ;;  %v4354_v28 = vpop.f32.mrf.mxu0  ;;  %v3038_v45 = vadd.f32 %v6153_v19, %v6162_v7  ;;  %v2439_v59 = vadd.f32 %v6038_v34, %v2172_v14 }
 0x1cb   : > { %v4304_v46 = vpop.f32.mrf.mxu1  ;;  %v2441_v56 = vadd.f32 %v6046_v47, %v2174_v10  ;;  %v2176_v13 = vadd.f32 %v6056_v42, %v5952_v23 }
 0x1cc   : > { %3009 = vst [vmem:[%s6158_s7 + $0x18] sm:$0xff] %v6169_v44  ;;  %v6178_v53 = vadd.f32 %v2825_v63, %v2706_v15  ;;  %v2709_v5 = vadd.f32 %v4304_v46, %v2438_v29  ;;  %v2835_v30 = vpop.f32.mrf.mxu0  ;;  %v2178_v46 = vadd.f32 %v6064_v22, %v5958_v52 }
 0x1cd   : > { %v2565_v43 = vpop.f32.mrf.mxu1 }
 0x1ce   : > { %3008 = vst [vmem:[%s6158_s7 + $0x10] sm:$0xff] %v6178_v53  ;;  %v3039_v4 = vadd.f32 %v3038_v45, %v6178_v53  ;;  %v6186_v62 = vadd.f32 %v4354_v28, %v2709_v5  ;;  %v2708_v20 = vadd.f32 %v2565_v43, %v2437_v39  ;;  %v4357_v0 = vpop.f32.mrf.mxu0  ;;  %v2444_v28 = vadd.f32 %v6050_v9, %v2177_v57 }
 0x1cf   : > { %v4307_v41 = vpop.f32.mrf.mxu1  ;;  %v2443_v45 = vadd.f32 %v6054_v12, %v2176_v13  ;;  %v2181_v43 = vadd.f32 %v6068_v8, %v5961_v6 }
 0x1d0   : > { %3011 = vst [vmem:[%s6158_s7 + $0x28] sm:$0xff] %v6186_v62  ;;  %v6193_v48 = vadd.f32 %v2835_v30, %v2708_v20  ;;  %v3040_v38 = vadd.f32 %v3039_v4, %v6169_v44  ;;  %v2711_v26 = vadd.f32 %v4307_v41, %v2440_v24  ;;  %v2845_v31 = vpop.f32.mrf.mxu0  ;;  %v2446_v30 = vadd.f32 %v6058_v36, %v2179_v18  ;;  %v6800_v18 = vld [vmem:[#allocation45_spill] sm:$0xff] }
 0x1d1   : > { %v2575_v54 = vpop.f32.mrf.mxu1  ;;  %v2445_v4 = vadd.f32 %v6062_v3, %v2178_v46  ;;  %v2183_v41 = vadd.f32 %v6076_v51, %v5967_v25  ;;  %v6802_v46 = vld [vmem:[#allocation46_spill] sm:$0xff] }
 0x1d2   : > { %3010 = vst [vmem:[%s6158_s7 + $0x20] sm:$0xff] %v6193_v48  ;;  %v3041_v32 = vadd.f32 %v3040_v38, %v6193_v48  ;;  %v6202_v34 = vadd.f32 %v4357_v0, %v2711_v26  ;;  %v2710_v27 = vadd.f32 %v2575_v54, %v2439_v59  ;;  %v4360_v21 = vpop.f32.mrf.mxu0  ;;  %v2180_v0 = vadd.f32 %v6072_v61, %v5964_v16 }
 0x1d3   : > { %v4310_v63 = vpop.f32.mrf.mxu1  ;;  %v2448_v38 = vadd.f32 %v6066_v37, %v2181_v43 }
 0x1d4   : > { %3013 = vst [vmem:[%s6158_s7 + $0x38] sm:$0xff] %v6202_v34  ;;  %v6209_v49 = vadd.f32 %v2845_v31, %v2710_v27  ;;  %v3042_v40 = vadd.f32 %v3041_v32, %v6186_v62  ;;  %v2713_v33 = vadd.f32 %v4310_v63, %v2442_v1  ;;  %v2855_v29 = vpop.f32.mrf.mxu0  ;;  %v2182_v31 = vadd.f32 %v6080_v35, %v5970_v11 }
 0x1d5   : > { %v2585_v15 = vpop.f32.mrf.mxu1  ;;  %v2447_v54 = vadd.f32 %v6070_v58, %v2180_v0  ;;  %v2450_v32 = vadd.f32 %v6074_v60, %v2183_v41  ;;  %v6807_v0 = vld [vmem:[#allocation13_spill] sm:$0xff] }
 0x1d6   : > { %3012 = vst [vmem:[%s6158_s7 + $0x30] sm:$0xff] %v6209_v49  ;;  %v3043_v23 = vadd.f32 %v3042_v40, %v6209_v49  ;;  %v6218_v47 = vadd.f32 %v4360_v21, %v2713_v33  ;;  %v2712_v42 = vadd.f32 %v2585_v15, %v2441_v56  ;;  %v4363_v39 = vpop.f32.mrf.mxu0  ;;  %v6797_v21 = vld [vmem:[#allocation44_spill] sm:$0xff]  ;;  %v6798_v56 = vld [vmem:[#allocation11_spill] sm:$0xff] }
 0x1d7   : > { %v4313_v14 = vpop.f32.mrf.mxu1  ;;  %v2185_v63 = vadd.f32 %v6798_v56, %v6797_v21  ;;  %v6799_v40 = vld [vmem:[#allocation8_spill] sm:$0xff]  ;;  %v6801_v15 = vld [vmem:[#allocation15_spill] sm:$0xff]  ;;  %v6812_v56 = vld [vmem:[#allocation49_spill] sm:$0xff] }
 0x1d8   : > { %3015 = vst [vmem:[%s6158_s7 + $0x48] sm:$0xff] %v6218_v47  ;;  %v6225_v50 = vadd.f32 %v2855_v29, %v2712_v42  ;;  %v3044_v9 = vadd.f32 %v3043_v23, %v6202_v34  ;;  %v2715_v17 = vadd.f32 %v4313_v14, %v2444_v28  ;;  %v2865_v5 = vpop.f32.mrf.mxu0  ;;  %v2449_v33 = vadd.f32 %v6799_v40, %v2182_v31  ;;  %v6803_v14 = vld [vmem:[#allocation19_spill] sm:$0xff]  ;;  %v6810_v31 = vld [vmem:[#allocation28_spill] sm:$0xff] }
 0x1d9   : > { %v2595_v55 = vpop.f32.mrf.mxu1  ;;  %v2184_v28 = vadd.f32 %v6801_v15, %v6800_v18  ;;  %v6815_v18 = vld [vmem:[#allocation12_spill] sm:$0xff] }
 0x1da   : > { %3014 = vst [vmem:[%s6158_s7 + $0x40] sm:$0xff] %v6225_v50  ;;  %v3045_v52 = vadd.f32 %v3044_v9, %v6225_v50  ;;  %v6234_v12 = vadd.f32 %v4363_v39, %v2715_v17  ;;  %v2714_v22 = vadd.f32 %v2595_v55, %v2443_v45  ;;  %v4366_v24 = vpop.f32.mrf.mxu0  ;;  %v2187_v45 = vadd.f32 %v6803_v14, %v6802_v46  ;;  %v6804_v17 = vld [vmem:[#allocation9_spill] sm:$0xff] }
 0x1db   : > { %v4316_v20 = vpop.f32.mrf.mxu1 }
 0x1dc   : > { %3017 = vst [vmem:[%s6158_s7 + $0x58] sm:$0xff] %v6234_v12  ;;  %v6241_v36 = vadd.f32 %v2865_v5, %v2714_v22  ;;  %v3046_v6 = vadd.f32 %v3045_v52, %v6218_v47  ;;  %v2717_v8 = vadd.f32 %v4316_v20, %v2446_v30  ;;  %v2875_v10 = vpop.f32.mrf.mxu0  ;;  %v2452_v5 = vadd.f32 %v6804_v17, %v2185_v63  ;;  %v6805_v22 = vld [vmem:[#allocation47_spill] sm:$0xff]  ;;  %v6813_v63 = vld [vmem:[#allocation33_spill] sm:$0xff]  ;;  %v6818_v17 = vld [vmem:[#allocation14_spill] sm:$0xff] }
 0x1dd   : > { %v2605_v59 = vpop.f32.mrf.mxu1 }
 0x1de   : > { %3016 = vst [vmem:[%s6158_s7 + $0x50] sm:$0xff] %v6241_v36  ;;  %v3047_v16 = vadd.f32 %v3046_v6, %v6241_v36  ;;  %v6250_v3 = vadd.f32 %v4366_v24, %v2717_v8  ;;  %v2716_v61 = vadd.f32 %v2605_v59, %v2445_v4  ;;  %v4369_v26 = vpop.f32.mrf.mxu0  ;;  %v6806_v24 = vld [vmem:[#allocation23_spill] sm:$0xff]  ;;  %v2451_v6 = vadd.f32 %v6807_v0, %v2184_v28 }
 0x1df   : > { %v4319_v1 = vpop.f32.mrf.mxu1  ;;  %v2186_v4 = vadd.f32 %v6806_v24, %v6805_v22  ;;  %v6820_v0 = vld [vmem:[#allocation35_spill] sm:$0xff] }
 0x1e0   : > { %3019 = vst [vmem:[%s6158_s7 + $0x68] sm:$0xff] %v6250_v3  ;;  %v6257_v25 = vadd.f32 %v2875_v10, %v2716_v61  ;;  %v3048_v51 = vadd.f32 %v3047_v16, %v6234_v12  ;;  %v2719_v37 = vadd.f32 %v4319_v1, %v2448_v38  ;;  %v2885_v57 = vpop.f32.mrf.mxu0  ;;  %v6808_v38 = vld [vmem:[#allocation17_spill] sm:$0xff] }
 0x1e1   : > { %v2615_v27 = vpop.f32.mrf.mxu1  ;;  %v2454_v16 = vadd.f32 %v6808_v38, %v2187_v45 }
 0x1e2   : > { %3018 = vst [vmem:[%s6158_s7 + $0x60] sm:$0xff] %v6257_v25  ;;  %v3049_v11 = vadd.f32 %v3048_v51, %v6257_v25  ;;  %v6266_v35 = vadd.f32 %v4369_v26, %v2719_v37  ;;  %v2718_v58 = vadd.f32 %v2615_v27, %v2447_v54  ;;  %v4372_v13 = vpop.f32.mrf.mxu0  ;;  %v6809_v26 = vld [vmem:[#allocation48_spill] sm:$0xff] }
 0x1e3   : > { %v4322_v29 = vpop.f32.mrf.mxu1  ;;  %v2189_v1 = vadd.f32 %v6810_v31, %v6809_v26  ;;  %v6822_v31 = vld [vmem:[#allocation37_spill] sm:$0xff] }
 0x1e4   : > { %3021 = vst [vmem:[%s6158_s7 + $0x78] sm:$0xff] %v6266_v35  ;;  %v6273_v60 = vadd.f32 %v2885_v57, %v2718_v58  ;;  %v3050_v23 = vadd.f32 %v3049_v11, %v6250_v3  ;;  %v2721_v42 = vadd.f32 %v4322_v29, %v2450_v32  ;;  %v2895_v39 = vpop.f32.mrf.mxu0  ;;  %v6811_v32 = vld [vmem:[#allocation21_spill] sm:$0xff]  ;;  %v2188_v11 = vadd.f32 %v6813_v63, %v6812_v56  ;;  %v6814_v29 = vld [vmem:[#allocation50_spill] sm:$0xff]  ;;  %v6825_v63 = vld [vmem:[#allocation32_spill] sm:$0xff] }
 0x1e5   : > { %v2625_v9 = vpop.f32.mrf.mxu1  ;;  %v2453_v27 = vadd.f32 %v6811_v32, %v2186_v4  ;;  %v2191_v15 = vadd.f32 %v6815_v18, %v6814_v29 }
 0x1e6   : > { %3020 = vst [vmem:[%s6158_s7 + $0x70] sm:$0xff] %v6273_v60  ;;  %v3051_v30 = vadd.f32 %v3050_v23, %v6273_v60  ;;  %v6282_v55 = vadd.f32 %v4372_v13, %v2721_v42  ;;  %v2720_v43 = vadd.f32 %v2625_v9, %v2449_v33  ;;  %v4375_v52 = vpop.f32.mrf.mxu0  ;;  %v6816_v23 = vld [vmem:[#allocation26_spill] sm:$0xff] }
 0x1e7   : > { %v4325_v20 = vpop.f32.mrf.mxu1  ;;  %v2456_v42 = vadd.f32 %v6816_v23, %v2189_v1  ;;  %v6817_v9 = vld [vmem:[#allocation22_spill] sm:$0xff] }
 0x1e8   : > { %3023 = vst [vmem:[%s6158_s7 + $0x88] sm:$0xff] %v6282_v55  ;;  %v6289_v8 = vadd.f32 %v2895_v39, %v2720_v43  ;;  %v3052_v10 = vadd.f32 %v3051_v30, %v6266_v35  ;;  %v2723_v41 = vadd.f32 %v4325_v20, %v2452_v5  ;;  %v2905_v59 = vpop.f32.mrf.mxu0  ;;  %v2190_v5 = vadd.f32 %v6818_v17, %v6817_v9  ;;  %v6819_v43 = vld [vmem:[#allocation31_spill] sm:$0xff] }
 0x1e9   : > { %v2635_v61 = vpop.f32.mrf.mxu1  ;;  %v6830_v9 = vld [vmem:[#allocation39_spill] sm:$0xff] }
 0x1ea   : > { %3022 = vst [vmem:[%s6158_s7 + $0x80] sm:$0xff] %v6289_v8  ;;  %v3053_v54 = vadd.f32 %v3052_v10, %v6289_v8  ;;  %v6298_v51 = vadd.f32 %v4375_v52, %v2723_v41  ;;  %v2722_v37 = vadd.f32 %v2635_v61, %v2451_v6  ;;  %v4378_v57 = vpop.f32.mrf.mxu0  ;;  %v2455_v52 = vadd.f32 %v6819_v43, %v2188_v11  ;;  %v6821_v41 = vld [vmem:[#allocation27_spill] sm:$0xff]  ;;  %v6826_v11 = vld [vmem:[#allocation29_spill] sm:$0xff] }
 0x1eb   : > { %v4328_v21 = vpop.f32.mrf.mxu1  ;;  %v2458_v6 = vadd.f32 %v6820_v0, %v2191_v15  ;;  %v2457_v1 = vadd.f32 %v6822_v31, %v2190_v5  ;;  %v6832_v0 = vld [vmem:[#allocation36_spill] sm:$0xff] }
 0x1ec   : > { %3025 = vst [vmem:[%s6158_s7 + $0x98] sm:$0xff] %v6298_v51  ;;  %v6305_v58 = vadd.f32 %v2905_v59, %v2722_v37  ;;  %v3054_v13 = vadd.f32 %v3053_v54, %v6282_v55  ;;  %v2725_v40 = vadd.f32 %v4328_v21, %v2454_v16  ;;  %v2915_v33 = vpop.f32.mrf.mxu0  ;;  %v2193_v59 = vadd.f32 %v6116_v2, %v6821_v41  ;;  %v6823_v37 = vld [vmem:[#allocation30_spill] sm:$0xff] }
 0x1ed   : > { %v2645_v28 = vpop.f32.mrf.mxu1 }
 0x1ee   : > { %3024 = vst [vmem:[%s6158_s7 + $0x90] sm:$0xff] %v6305_v58  ;;  %v3055_v39 = vadd.f32 %v3054_v13, %v6305_v58  ;;  %v6314_v46 = vadd.f32 %v4378_v57, %v2725_v40  ;;  %v2724_v14 = vadd.f32 %v2645_v28, %v2453_v27  ;;  %v4381_v45 = vpop.f32.mrf.mxu0  ;;  %v6824_v57 = vld [vmem:[#allocation20_spill] sm:$0xff]  ;;  %v2195_v13 = vadd.f32 %v6826_v11, %v6825_v63  ;;  %v6837_v11 = vld [vmem:[#allocation10_spill] sm:$0xff] }
 0x1ef   : > { %v4331_v30 = vpop.f32.mrf.mxu1  ;;  %v2192_v32 = vadd.f32 %v6824_v57, %v6823_v37  ;;  %v6836_v37 = vld [vmem:[#allocation42_spill] sm:$0xff] }
 0x1f0   : > { %3027 = vst [vmem:[%s6158_s7 + $0xa8] sm:$0xff] %v6314_v46  ;;  %v6321_v22 = vadd.f32 %v2915_v33, %v2724_v14  ;;  %v3056_v24 = vadd.f32 %v3055_v39, %v6298_v51  ;;  %v2727_v4 = vadd.f32 %v4331_v30, %v2456_v42  ;;  %v2925_v20 = vpop.f32.mrf.mxu0  ;;  %v6827_v33 = vld [vmem:[#allocation24_spill] sm:$0xff]  ;;  %v6828_v42 = vld [vmem:[#allocation34_spill] sm:$0xff] }
 0x1f1   : > { %v2655_v10 = vpop.f32.mrf.mxu1  ;;  %v2460_v29 = vadd.f32 %v6827_v33, %v2193_v59  ;;  %v6829_v39 = vld [vmem:[#allocation40_spill] sm:$0xff]  ;;  %v2459_v17 = vadd.f32 %v6830_v9, %v2192_v32 }
 0x1f2   : > { %3026 = vst [vmem:[%s6158_s7 + $0xa0] sm:$0xff] %v6321_v22  ;;  %v3057_v38 = vadd.f32 %v3056_v24, %v6321_v22  ;;  %v6330_v16 = vadd.f32 %v4381_v45, %v2727_v4  ;;  %v2726_v61 = vadd.f32 %v2655_v10, %v2455_v52  ;;  %v4384_v26 = vpop.f32.mrf.mxu0  ;;  %v2194_v14 = vadd.f32 %v6829_v39, %v6828_v42  ;;  %v6831_v24 = vld [vmem:[#allocation16_spill] sm:$0xff] }
 0x1f3   : > { %v4334_v54 = vpop.f32.mrf.mxu1  ;;  %v2462_v4 = vadd.f32 %v6831_v24, %v2195_v13 }
 0x1f4   : > { %3029 = vst [vmem:[%s6158_s7 + $0xb8] sm:$0xff] %v6330_v16  ;;  %v6337_v27 = vadd.f32 %v2925_v20, %v2726_v61  ;;  %v3058_v2 = vadd.f32 %v3057_v38, %v6314_v46  ;;  %v2729_v21 = vadd.f32 %v4334_v54, %v2458_v6  ;;  %v2935_v56 = vpop.f32.mrf.mxu0  ;;  %v6833_v6 = vld [vmem:[#allocation25_spill] sm:$0xff]  ;;  %v6835_v54 = vld [vmem:[#allocation38_spill] sm:$0xff] }
 0x1f5   : > { %v2665_v40 = vpop.f32.mrf.mxu1  ;;  %v2197_v10 = vadd.f32 %v6833_v6, %v6832_v0  ;;  %v2196_v57 = vadd.f32 %v6836_v37, %v6835_v54 }
 0x1f6   : > { %3028 = vst [vmem:[%s6158_s7 + $0xb0] sm:$0xff] %v6337_v27  ;;  %v3059_v18 = vadd.f32 %v3058_v2, %v6337_v27  ;;  %v6346_v15 = vadd.f32 %v4384_v26, %v2729_v21  ;;  %v2728_v28 = vadd.f32 %v2665_v40, %v2457_v1  ;;  %v4387_v23 = vpop.f32.mrf.mxu0  ;;  %v6834_v26 = vld [vmem:[#allocation18_spill] sm:$0xff] }
 0x1f7   : > { %v4337_v45 = vpop.f32.mrf.mxu1  ;;  %v2461_v31 = vadd.f32 %v6834_v26, %v2194_v14  ;;  %v2464_v13 = vadd.f32 %v6837_v11, %v2197_v10 }
 0x1f8   : > { %3031 = vst [vmem:[%s6158_s7 + $0xc8] sm:$0xff] %v6346_v15  ;;  %v6353_v5 = vadd.f32 %v2935_v56, %v2728_v28  ;;  %v3060_v30 = vadd.f32 %v3059_v18, %v6330_v16  ;;  %v2731_v43 = vadd.f32 %v4337_v45, %v2460_v29  ;;  %v2945_v52 = vpop.f32.mrf.mxu0 }
 0x1f9   : > { %v2675_v20 = vpop.f32.mrf.mxu1 }
 0x1fa   : > { %3030 = vst [vmem:[%s6158_s7 + $0xc0] sm:$0xff] %v6353_v5  ;;  %v3061_v41 = vadd.f32 %v3060_v30, %v6353_v5  ;;  %v6362_v59 = vadd.f32 %v4387_v23, %v2731_v43  ;;  %v2730_v38 = vadd.f32 %v2675_v20, %v2459_v17  ;;  %v4390_v61 = vpop.f32.mrf.mxu0  ;;  %v6838_v23 = vld [vmem:[#allocation41_spill] sm:$0xff] }
 0x1fb   : > { %v4340_v1 = vpop.f32.mrf.mxu1  ;;  %v2463_v42 = vadd.f32 %v6838_v23, %v2196_v57 }
 0x1fc   : > { %3033 = vst [vmem:[%s6158_s7 + $0xd8] sm:$0xff] %v6362_v59  ;;  %v6369_v32 = vadd.f32 %v2945_v52, %v2730_v38  ;;  %v3062_v2 = vadd.f32 %v3061_v41, %v6346_v15  ;;  %v2733_v21 = vadd.f32 %v4340_v1, %v2462_v4  ;;  %v2955_v56 = vpop.f32.mrf.mxu0 }
 0x1fd   : > { %v2685_v63 = vpop.f32.mrf.mxu1 }
 0x1fe   : > { %3032 = vst [vmem:[%s6158_s7 + $0xd0] sm:$0xff] %v6369_v32  ;;  %v3063_v40 = vadd.f32 %v3062_v2, %v6369_v32  ;;  %v6376_v33 = vadd.f32 %v4390_v61, %v2733_v21  ;;  %v2732_v29 = vadd.f32 %v2685_v63, %v2461_v31  ;;  %v4393_v28 = vpop.f32.mrf.mxu0 }
 0x1ff   : > { %v4343_v18 = vpop.f32.mrf.mxu1 }
 0x200   : > { %3035 = vst [vmem:[%s6158_s7 + $0xe8] sm:$0xff] %v6376_v33  ;;  %v6381_v39 = vadd.f32 %v2955_v56, %v2732_v29  ;;  %v3064_v14 = vadd.f32 %v3063_v40, %v6362_v59  ;;  %v2735_v45 = vadd.f32 %v4343_v18, %v2464_v13  ;;  %v2965_v52 = vpop.f32.mrf.mxu0 }
 0x201   : > { %v2695_v9 = vpop.f32.mrf.mxu1 }
 0x202   : > { %3034 = vst [vmem:[%s6158_s7 + $0xe0] sm:$0xff] %v6381_v39  ;;  %v3065_v17 = vadd.f32 %v3064_v14, %v6381_v39  ;;  %v6389_v30 = vadd.f32 %v4393_v28, %v2735_v45  ;;  %v2734_v43 = vadd.f32 %v2695_v9, %v2463_v42 }
 0x204   : > { %3037 = vst [vmem:[%s6158_s7 + $0xf8] sm:$0xff] %v6389_v30  ;;  %v6400_v24 = vadd.f32 %v2965_v52, %v2734_v43  ;;  %v3066_v4 = vadd.f32 %v3065_v17, %v6376_v33 }
 0x206   : > { %3036 = vst [vmem:[%s6158_s7 + $0xf0] sm:$0xff] %v6400_v24  ;;  %v3067_v20 = vadd.f32 %v3066_v4, %v6400_v24 }
 0x207   : > { %4472 = shalt.err (!%p4469_p5)
}
 0x208   : > { %s4473_s28 = scalar_lea.hbm %s6394_s18, 4096  ;;  %s4477_s4 = scalar_lea.hbm %s6541_s2, 8192 }
 0x209   : > { %p4474_p6 = scmp.ne.s32.totalorder %s6394_s18, %s4473_s28  ;;  %p4478_p10 = scmp.lt.s32.totalorder %s6394_s18, %s6541_s2 }
 0x20a   : > { %p4479_p11 = scmp.lt.s32.totalorder %s4477_s4, %s4473_s28 }
 0x20b   : > { %p4475_p7 = pnand %p4474_p6, %p4631_p4 }
 0x20c   : > { %p4480_p12 = por %p4479_p11, %p4478_p10 }
 0x20d   : > { %p4476_p9 = pneg %p4475_p7 }
 0x20f   : > { %p4481_p13 = pnand %p4480_p12, %p4476_p9 }
 0x211   : > { %4484 = shalt.err (!%p4481_p13)
}
 0x212   : > { %s4568_s8 = smov 128   ;;  %s4569_s10 = smov 8   ;;  %v3068_v0 = vadd.f32 %v3067_v20, %v6389_v30 }
 0x213   : > { %4397 = dma.vmem_to_hbm [thread:$0]  (%p4631_p4), %s6396_s9, 4096, %s6394_s18, %s3180_s19, %s4568_s8, %s4568_s8, %s4569_s10  }
 0x214   : > { %v3069_v6 = vrot.slane %v3068_v0, 4  ;;  %s3340_s11 = sshll.u32 %s6136_s5, 1  ;;  %s3643_s9 = sshll.u32 %s4557_s15, 5 }
 0x215   : > { %s6431_s21 = scalar_lea.vmem [#allocation4], %s3340_s11  ;;  %s3214_s26 = scalar_lea.hbm %s6542_s3, %s3643_s9 }
 0x216   : > { %v3070_v10 = vadd.f32 %v3069_v6, %v3068_v0  ;;  %s3216_s18 = sshll.u32 %s6431_s21, 4  ;;  %s3185_s27 = scalar_lea.sflag [#allocation5], %s6136_s5  ;;  %s3217_s18 = int_to_ptr.vmem [resolvable:$true] %s3216_s18 }
 0x217   : > { %s4485_s28 = scalar_lea.vmem %s3217_s18, 32  ;;  %s4570_s29 = smov [#allocation4]  }
 0x218   : > { %v3071_v41 = vrot.slane %v3070_v10, 2  ;;  %p4486_p0 = scmp.ne.s32.totalorder %s3217_s18, %s4485_s28  ;;  %s4489_s30 = sshll.u32 %s4570_s29, 4  ;;  %s4490_s30 = int_to_ptr.vmem [resolvable:$false] %s4489_s30 }
 0x219   : > { %s4491_s4 = scalar_lea.vmem %s4490_s30, 64  ;;  %p4492_p3 = scmp.lt.s32.totalorder %s3217_s18, %s4490_s30 }
 0x21a   : > { %v3072_v38 = vadd.f32 %v3071_v41, %v3070_v10  ;;  %p4487_p1 = pnand %p4486_p0, %p4631_p4  ;;  %p4493_p5 = scmp.lt.s32.totalorder %s4491_s4, %s4485_s28 }
 0x21c   : > { %v3073_v61 = vrot.slane %v3072_v38, 1  ;;  %p4488_p2 = pneg %p4487_p1  ;;  %p4494_p6 = por %p4493_p5, %p4492_p3 }
 0x21e   : > { %v3074_v26 = vadd.f32 %v3073_v61, %v3072_v38  ;;  %p4495_p7 = pnand %p4494_p6, %p4488_p2 }
 0x220   : > { %v3075_v31 = vmul.f32 0.00390625, %v3074_v26  ;;  %3108 = vst [vmem:[%s6431_s21] sm:$0x1] %v3074_v26 }
 0x222   : > { %v3084_v1 = vsub.f32 %v6225_v50, %v3075_v31  ;;  %v3086_v54 = vsub.f32 %v6241_v36, %v3075_v31  ;;  %v3087_v37 = vsub.f32 %v6234_v12, %v3075_v31  ;;  %v3088_v57 = vsub.f32 %v6257_v25, %v3075_v31 }
 0x223   : > { %v3089_v2 = vsub.f32 %v6250_v3, %v3075_v31  ;;  %v3090_v21 = vsub.f32 %v6273_v60, %v3075_v31  ;;  %v3091_v56 = vsub.f32 %v6266_v35, %v3075_v31  ;;  %v3092_v63 = vsub.f32 %v6289_v8, %v3075_v31 }
 0x224   : > { %v3093_v11 = vsub.f32 %v6282_v55, %v3075_v31  ;;  %v3094_v13 = vsub.f32 %v6305_v58, %v3075_v31  ;;  %v3095_v50 = vsub.f32 %v6298_v51, %v3075_v31  ;;  %v3096_v36 = vsub.f32 %v6321_v22, %v3075_v31 }
 0x225   : > { %v3097_v12 = vsub.f32 %v6314_v46, %v3075_v31  ;;  %v3098_v25 = vsub.f32 %v6337_v27, %v3075_v31  ;;  %v3099_v3 = vsub.f32 %v6330_v16, %v3075_v31  ;;  %v6450_v60 = vsub.f32 %v6353_v5, %v3075_v31 }
 0x226   : > { %v6453_v35 = vsub.f32 %v6346_v15, %v3075_v31  ;;  %v6456_v55 = vsub.f32 %v6369_v32, %v3075_v31  ;;  %v6459_v8 = vsub.f32 %v6362_v59, %v3075_v31  ;;  %v6462_v51 = vsub.f32 %v6381_v39, %v3075_v31 }
 0x227   : > { %v6465_v58 = vsub.f32 %v6376_v33, %v3075_v31  ;;  %v6468_v46 = vsub.f32 %v6400_v24, %v3075_v31  ;;  %v6471_v22 = vsub.f32 %v6389_v30, %v3075_v31  ;;  %v3076_v16 = vsub.f32 %v6162_v7, %v3075_v31 }
 0x228   : > { %v3077_v27 = vsub.f32 %v6153_v19, %v3075_v31  ;;  %v3078_v15 = vsub.f32 %v6178_v53, %v3075_v31  ;;  %v3079_v32 = vsub.f32 %v6169_v44, %v3075_v31  ;;  %v3080_v40 = vsub.f32 %v6193_v48, %v3075_v31 }
 0x229   : > { %v3109_v5 = vmul.f32 %v3076_v16, %v3076_v16  ;;  %v3081_v18 = vsub.f32 %v6186_v62, %v3075_v31  ;;  %v3082_v42 = vsub.f32 %v6209_v49, %v3075_v31  ;;  %v3083_v19 = vsub.f32 %v6202_v34, %v3075_v31 }
 0x22a   : > { %v3110_v59 = vmul.f32 %v3077_v27, %v3077_v27  ;;  %v3111_v33 = vmul.f32 %v3078_v15, %v3078_v15  ;;  %v3112_v28 = vmul.f32 %v3079_v32, %v3079_v32  ;;  %v3113_v39 = vmul.f32 %v3080_v40, %v3080_v40 }
 0x22b   : > { %v3114_v14 = vmul.f32 %v3081_v18, %v3081_v18  ;;  %v3115_v45 = vmul.f32 %v3082_v42, %v3082_v42  ;;  %v3085_v44 = vsub.f32 %v6218_v47, %v3075_v31  ;;  %v3116_v17 = vmul.f32 %v3083_v19, %v3083_v19 }
 0x22c   : > { %v3141_v29 = vadd.f32 %v3110_v59, %v3109_v5  ;;  %v3117_v30 = vmul.f32 %v3084_v1, %v3084_v1  ;;  %v3119_v24 = vmul.f32 %v3086_v54, %v3086_v54  ;;  %v3120_v20 = vmul.f32 %v3087_v37, %v3087_v37 }
 0x22d   : > { %v3118_v52 = vmul.f32 %v3085_v44, %v3085_v44  ;;  %v3121_v0 = vmul.f32 %v3088_v57, %v3088_v57  ;;  %v3122_v10 = vmul.f32 %v3089_v2, %v3089_v2  ;;  %v3123_v41 = vmul.f32 %v3090_v21, %v3090_v21 }
 0x22e   : > { %v3142_v23 = vadd.f32 %v3141_v29, %v3111_v33  ;;  %v3124_v61 = vmul.f32 %v3091_v56, %v3091_v56  ;;  %v3125_v16 = vmul.f32 %v3092_v63, %v3092_v63  ;;  %v3126_v31 = vmul.f32 %v3093_v11, %v3093_v11 }
 0x22f   : > { %v3127_v1 = vmul.f32 %v3094_v13, %v3094_v13  ;;  %v3128_v5 = vmul.f32 %v3095_v50, %v3095_v50  ;;  %v3129_v54 = vmul.f32 %v3096_v36, %v3096_v36  ;;  %v3130_v37 = vmul.f32 %v3097_v12, %v3097_v12 }
 0x230   : > { %v3143_v7 = vadd.f32 %v3142_v23, %v3112_v28  ;;  %v3131_v57 = vmul.f32 %v3098_v25, %v3098_v25  ;;  %v3132_v2 = vmul.f32 %v3099_v3, %v3099_v3  ;;  %v3133_v21 = vmul.f32 %v6450_v60, %v6450_v60 }
 0x231   : > { %v3134_v63 = vmul.f32 %v6453_v35, %v6453_v35  ;;  %v3135_v13 = vmul.f32 %v6456_v55, %v6456_v55  ;;  %v3136_v36 = vmul.f32 %v6459_v8, %v6459_v8  ;;  %v3137_v25 = vmul.f32 %v6462_v51, %v6462_v51 }
 0x232   : > { %v3144_v53 = vadd.f32 %v3143_v7, %v3113_v39  ;;  %v3138_v60 = vmul.f32 %v6465_v58, %v6465_v58  ;;  %v3139_v35 = vmul.f32 %v6468_v46, %v6468_v46  ;;  %v3140_v28 = vmul.f32 %v6471_v22, %v6471_v22 }
 0x234   : > { %v3145_v9 = vadd.f32 %v3144_v53, %v3114_v14 }
 0x236   : > { %v3146_v48 = vadd.f32 %v3145_v9, %v3115_v45 }
 0x238   : > { %v3147_v43 = vadd.f32 %v3146_v48, %v3116_v17 }
 0x23a   : > { %v3148_v62 = vadd.f32 %v3147_v43, %v3117_v30 }
 0x23c   : > { %v3149_v4 = vadd.f32 %v3148_v62, %v3118_v52 }
 0x23e   : > { %v3150_v49 = vadd.f32 %v3149_v4, %v3119_v24 }
 0x240   : > { %v3151_v6 = vadd.f32 %v3150_v49, %v3120_v20 }
 0x242   : > { %v3152_v34 = vadd.f32 %v3151_v6, %v3121_v0 }
 0x244   : > { %v3153_v38 = vadd.f32 %v3152_v34, %v3122_v10 }
 0x246   : > { %v3154_v26 = vadd.f32 %v3153_v38, %v3123_v41 }
 0x248   : > { %v3155_v47 = vadd.f32 %v3154_v26, %v3124_v61 }
 0x24a   : > { %v3156_v27 = vadd.f32 %v3155_v47, %v3125_v16 }
 0x24c   : > { %v3157_v15 = vadd.f32 %v3156_v27, %v3126_v31 }
 0x24e   : > { %v3158_v59 = vadd.f32 %v3157_v15, %v3127_v1 }
 0x250   : > { %v3159_v32 = vadd.f32 %v3158_v59, %v3128_v5 }
 0x252   : > { %v3160_v40 = vadd.f32 %v3159_v32, %v3129_v54 }
 0x254   : > { %v3161_v33 = vadd.f32 %v3160_v40, %v3130_v37 }
 0x256   : > { %v3162_v29 = vadd.f32 %v3161_v33, %v3131_v57 }
 0x258   : > { %v3163_v56 = vadd.f32 %v3162_v29, %v3132_v2 }
 0x25a   : > { %v3164_v11 = vadd.f32 %v3163_v56, %v3133_v21 }
 0x25c   : > { %v3165_v50 = vadd.f32 %v3164_v11, %v3134_v63 }
 0x25e   : > { %v3166_v12 = vadd.f32 %v3165_v50, %v3135_v13 }
 0x260   : > { %v3167_v3 = vadd.f32 %v3166_v12, %v3136_v36 }
 0x262   : > { %v3168_v18 = vadd.f32 %v3167_v3, %v3137_v25 }
 0x264   : > { %v3169_v55 = vadd.f32 %v3168_v18, %v3138_v60 }
 0x266   : > { %v3170_v8 = vadd.f32 %v3169_v55, %v3139_v35 }
 0x268   : > { %v3171_v23 = vadd.f32 %v3170_v8, %v3140_v28 }
 0x26a   : > { %v3172_v42 = vrot.slane %v3171_v23, 4 }
 0x26c   : > { %v3173_v39 = vadd.f32 %v3172_v42, %v3171_v23 }
 0x26e   : > { %v3174_v51 = vrot.slane %v3173_v39, 2 }
 0x270   : > { %v3175_v7 = vadd.f32 %v3174_v51, %v3173_v39 }
 0x272   : > { %v3176_v58 = vrot.slane %v3175_v7, 1 }
 0x274   : > { %v3177_v19 = vadd.f32 %v3176_v58, %v3175_v7 }
 0x276   : > { %3178 = vst [vmem:[%s6431_s21 + $0x1] sm:$0x1] %v3177_v19 }
 0x277   : > { %4498 = shalt.err (!%p4495_p7)
}
 0x278   : > { %s4499_s15 = scalar_lea.hbm %s3214_s26, 32  ;;  %s4503_s7 = scalar_lea.hbm %s6542_s3, 64 }
 0x279   : > { %p4500_p9 = scmp.ne.s32.totalorder %s3214_s26, %s4499_s15  ;;  %p4504_p12 = scmp.lt.s32.totalorder %s3214_s26, %s6542_s3 }
 0x27a   : > { %p4505_p13 = scmp.lt.s32.totalorder %s4503_s7, %s4499_s15 }
 0x27b   : > { %p4501_p10 = pnand %p4500_p9, %p4631_p4 }
 0x27c   : > { %p4506_p0 = por %p4505_p13, %p4504_p12 }
 0x27d   : > { %p4502_p11 = pneg %p4501_p10 }
 0x27f   : > { %p4507_p1 = pnand %p4506_p0, %p4502_p11 }
 0x281   : > { %4510 = shalt.err (!%p4507_p1)
}
 0x282   : > { %4398 = dma.vmem_to_hbm [thread:$0]  (%p4631_p4), %s3217_s18, 32, %s3214_s26, %s3185_s27  }
 0x283 PF: > { %p4408_p2 = scmp.ge.s32.totalorder %s4565_s17, 2  ;;  %s3228_s11 = sand.u32 1, %s4545_s12  }
 0x284   : > { %s3229_s21 = scalar_lea.sflag [#allocation3], %s3228_s11 }
 0x285   : > { %p4402_p3 = pnand %p4408_p2, %p4638_p8 }
 0x287   : > { %p4403_p5 = pneg %p4402_p3 }
 0x289   : > { %4536 = dma.done.wait (%p4403_p5), %s3229_s21, 4096  }
 0x28a   : > { %4538 = vsyncadd (%p4403_p5), %s3229_s21, 4294963200  ;;  %s3238_s9 = scalar_lea.sflag [#allocation5], %s3228_s11 }
 0x28b   : > { %4540 = dma.done.wait (%p4403_p5), %s3238_s9, 32  }
 0x28c   : > { %4542 = vsyncadd (%p4403_p5), %s3238_s9, 4294967264  ;;  %s20_s17 = sadd.s32 1, %s4565_s17   ;;  %s6839_s12 = smov %s4549_s13 }
 0x28d   : > { %p17_p6 = scmp.ge.s32.totalorder %s20_s17, 4   ;;  %s6840_s13 = smov %s4553_s14 }
 0x28e   : > { %s6841_s14 = smov %s4644_s25  ;;  %s6842_s15 = smov %s4561_s16 }
 0x28f   : > { %s6843_s16 = smov %s6845_s20  ;;  %19 = sbr.rel (!%p17_p6) target bundleno = 6 (0x6), region = 83 }
 0x294   :  { %3243 = vsyncpa [#allocation3], 1 }
 0x295   :  { %3245 = vsyncpa [#allocation3 + $0x1], 1 }
 0x296   :  { %3246 = vsyncpa [#allocation5], 1 }
 0x297   :  { %3248 = vsyncpa [#allocation5 + $0x1], 1 }

</bundles_post_ra>
